<compile_context>
chip_gen: v6e
topology: v6e:2x2x1
jax: 0.10.0
libtpu: 0.0.40
codegen_flags: <defaults>
</compile_context>

<pallas_src>
import functools

import jax
import jax.numpy as jnp
from jax.experimental import pallas as pl
from jax.experimental.pallas import tpu as pltpu


_VMEM_SPEC = pl.BlockSpec(memory_space=pltpu.MemorySpace.VMEM)


# ----------------------------------------------------------------------------
# Fused kernel
# ----------------------------------------------------------------------------
def _fused_lstm_char_kernel(*refs, seq_len, batch, hidden, vocab, num_layers):
    """Whole LSTMCharModel forward in one kernel.

    refs layout (inputs, output, scratch):
      tok      [T*B, 1] int32   time-major token ids (batch padded to 8)
      tok_rev  [T*B, 1] int32   time-REVERSED token ids
      per layer: A [D,8H] bf16, B [D,8H] bf16, bias [1,8H] f32, Whh [2H,8H] bf16
                 (merged gate layout [i_f i_b f_f f_b g_f g_b o_f o_b], g cols x2)
      fcw_m    [T, 2H, Vp] bf16  FC weight regrouped per merged step
      fc_b     [1, Vp] f32
      logits   [B, Vp] f32       (output)
      xp       [T*B, 8H] f32     (VMEM scratch: staged input projection)
    """
    T, B, H, V = seq_len, batch, hidden, vocab
    H2 = 2 * H
    tok_ref, tokr_ref = refs[0], refs[1]
    layer_refs = refs[2:2 + 4 * num_layers]
    fcw_ref = refs[2 + 4 * num_layers]
    fcb_ref = refs[3 + 4 * num_layers]
    logits_ref = refs[4 + 4 * num_layers]
    xp_ref = refs[5 + 4 * num_layers]
    Vp = logits_ref.shape[1]

    # -- embedding lookup as one-hot matmul (embedding already folded into A/B) --
    lane_ids = jax.lax.broadcasted_iota(jnp.int32, (T * B, V), 1)
    inp_big = (tok_ref[...] == lane_ids).astype(jnp.bfloat16)      # [T*B, V]
    inp_rev = (tokr_ref[...] == lane_ids).astype(jnp.bfloat16)     # [T*B, V]

    hcat_list = None
    for layer in range(num_layers):
        a_ref, b_ref, bias_ref, whh_ref = layer_refs[4 * layer:4 * layer + 4]

        # Hoisted input projection for all merged steps (off the serial chain),
        # staged in VMEM scratch to keep the unrolled body's vreg pressure low.
        xp = (jnp.dot(inp_big, a_ref[...], preferred_element_type=jnp.float32)
              + jnp.dot(inp_rev, b_ref[...], preferred_element_type=jnp.float32)
              + bias_ref[...])                                      # [T*B, 8H]
        xp_ref[...] = xp

        whh = whh_ref[...]                                          # [2H, 8H] bf16
        hcat = jnp.zeros((B, H2), jnp.float32)                      # [h_f | h_b]
        ccat = jnp.zeros((B, H2), jnp.float32)                      # [c_f | c_b]
        hcat_list = [None] * T
        for s in range(T):                                          # fully unrolled
            gates = xp_ref[pl.ds(s * B, B), :]                      # [B, 8H]
            if s > 0:
                gates = gates + jnp.dot(hcat.astype(jnp.bfloat16), whh,
                                        preferred_element_type=jnp.float32)
            # Single EUP pass over the whole gate slab; g = tanh via 2*sigma(2x)-1
            # (g columns were pre-scaled by 2 in the wrapper).
            sig = jax.nn.sigmoid(gates)
            i_g = sig[:, 0 * H2:1 * H2]
            f_g = sig[:, 1 * H2:2 * H2]
            g_g = 2.0 * sig[:, 2 * H2:3 * H2] - 1.0
            o_g = sig[:, 3 * H2:4 * H2]
            ccat = i_g * g_g if s == 0 else f_g * ccat + i_g * g_g
            hcat = o_g * jnp.tanh(ccat)
            hcat_list[s] = hcat
        if layer + 1 < num_layers:
            # Next layer's input (merged-step order and its time reversal); the
            # list reversal is free, the concat is pure vreg stacking.
            inp_big = jnp.concatenate(hcat_list, axis=0).astype(jnp.bfloat16)
            inp_rev = jnp.concatenate(hcat_list[::-1], axis=0).astype(jnp.bfloat16)

    # TODO(synk): dropout is identity here (eval-mode / p=0 semantics).

    # -- flatten + linear, fused as per-merged-step accumulation ----------------
    logits = jnp.broadcast_to(fcb_ref[...], (B, Vp)).astype(jnp.float32)
    for s in range(T):
        logits = logits + jnp.dot(hcat_list[s].astype(jnp.bfloat16), fcw_ref[s],
                                  preferred_element_type=jnp.float32)
    logits_ref[...] = logits


# ----------------------------------------------------------------------------
# Wrapper (layout plumbing: merged gate layout, embedding fold, padding)
# ----------------------------------------------------------------------------
def _round_up(x, m):
    return ((x + m - 1) // m) * m


def _place_merged(w, d, H):
    """[R,4H] (i,f,g,o blocks, one direction) -> [R,8H] merged layout
    [i_f i_b f_f f_b g_f g_b o_f o_b], direction d in {0 fwd, 1 bwd}.
    The g block is pre-scaled by 2 (tanh-via-sigmoid trick)."""
    R = w.shape[0]
    out = jnp.zeros((R, 8 * H), w.dtype)
    for k in range(4):
        blk = w[:, k * H:(k + 1) * H]
        if k == 2:
            blk = 2.0 * blk
        out = out.at[:, (2 * k + d) * H:(2 * k + d + 1) * H].set(blk)
    return out


def lstm_char_model_forward(params, tokens):
    """Forward pass matching LSTMCharModel.forward; returns [B, vocab] logits."""
    B, T = tokens.shape
    emb = params["embedding"]
    V, _E = emb.shape
    H = params["lstm"][0]["fwd"]["w_hh"].shape[0]
    num_layers = len(params["lstm"])

    B_pad = _round_up(B, 8)       # fill f32 sublanes
    V_pad = _round_up(V, 128)     # lane-dense logits -> unmasked stores

    # time-major, batch-padded token ids, fwd-time and reversed-time orders
    tok_tm = jnp.transpose(tokens).astype(jnp.int32)              # [T, B]
    if B_pad != B:
        tok_tm = jnp.pad(tok_tm, ((0, 0), (0, B_pad - B)))
    tok_flat = tok_tm.reshape(T * B_pad, 1)
    tok_rev_flat = tok_tm[::-1].reshape(T * B_pad, 1)

    args = [tok_flat, tok_rev_flat]
    for layer, layer_p in enumerate(params["lstm"]):
        pf, pb = layer_p["fwd"], layer_p["bwd"]
        if layer == 0:
            # fold the embedding table into layer-0 W_ih (in f32, once)
            a_w = _place_merged(emb @ pf["w_ih"], 0, H)           # [V, 8H]
            b_w = _place_merged(emb @ pb["w_ih"], 1, H)
        else:
            wf_m = _place_merged(pf["w_ih"], 0, H)                # [2H, 8H]
            wb_m = _place_merged(pb["w_ih"], 1, H)
            # rows act on hcat_s = [h_f(s) | h_b(T-1-s)] / hcat_{T-1-s}
            a_w = jnp.concatenate([wf_m[:H], wb_m[H:]], axis=0)
            b_w = jnp.concatenate([wb_m[:H], wf_m[H:]], axis=0)
        bias = _place_merged(pf["b"], 0, H) + _place_merged(pb["b"], 1, H)
        whh = jnp.concatenate([_place_merged(pf["w_hh"], 0, H),
                               _place_merged(pb["w_hh"], 1, H)], axis=0)
        args += [a_w.astype(jnp.bfloat16), b_w.astype(jnp.bfloat16),
                 bias.astype(jnp.float32), whh.astype(jnp.bfloat16)]

    # FC weight regrouped per merged step: rows 0:H from time s (fwd half),
    # rows H:2H from time T-1-s (bwd half); lane-padded to V_pad.
    fcw_t = params["fc_w"].reshape(T, 2 * H, V)
    fcw_m = jnp.concatenate([fcw_t[:, :H, :], fcw_t[::-1, H:, :]], axis=1)
    fc_b = params["fc_b"]
    if V_pad != V:
        fcw_m = jnp.pad(fcw_m, ((0, 0), (0, 0), (0, V_pad - V)))
        fc_b = jnp.pad(fc_b, ((0, 0), (0, V_pad - V)))
    args += [fcw_m.astype(jnp.bfloat16), fc_b.astype(jnp.float32)]

    kern = functools.partial(_fused_lstm_char_kernel, seq_len=T, batch=B_pad,
                             hidden=H, vocab=V, num_layers=num_layers)
    logits_pad = pl.pallas_call(
        kern,
        out_shape=jax.ShapeDtypeStruct((B_pad, V_pad), jnp.float32),
        in_specs=[_VMEM_SPEC] * len(args),
        out_specs=_VMEM_SPEC,
        scratch_shapes=[pltpu.VMEM((T * B_pad, 8 * H), jnp.float32)],
    )(*args)
    return logits_pad[:B, :V]


# ----------------------------------------------------------------------------
# Parameter construction (deterministic, synthetic)
# ----------------------------------------------------------------------------
def init_params(key, *, block_size, vocab_size, embedding_dim, hidden_dim,
                num_layers):
    H = hidden_dim
    keys = jax.random.split(key, 2 + 6 * num_layers * 2)
    ki = iter(keys)

    def rnd(k, shape, scale=0.1):
        return (scale * jax.random.normal(k, shape)).astype(jnp.float32)

    params = {"embedding": rnd(next(ki), (vocab_size, embedding_dim))}

    layers = []
    for layer in range(num_layers):
        d_in = embedding_dim if layer == 0 else 2 * H
        layer_p = {}
        for dname in ("fwd", "bwd"):
            layer_p[dname] = {
                "w_ih": rnd(next(ki), (d_in, 4 * H)),
                "w_hh": rnd(next(ki), (H, 4 * H)),
                # b_ih + b_hh folded into a single [1, 4H] bias
                "b": rnd(next(ki), (1, 4 * H)),
            }
        layers.append(layer_p)
    params["lstm"] = layers

    params["fc_w"] = rnd(next(ki), (2 * H * block_size, vocab_size))
    params["fc_b"] = rnd(jax.random.fold_in(key, 999), (1, vocab_size))
    return params


# ----------------------------------------------------------------------------
# Pure-JAX reference (for correctness cross-check)
# ----------------------------------------------------------------------------
def reference_forward(params, tokens):
    emb = jnp.take(params["embedding"], tokens, axis=0)           # [B, T, E]
    x = jnp.transpose(emb, (1, 0, 2))                             # [T, B, E]
    T, B, _ = x.shape
    H = params["lstm"][0]["fwd"]["w_hh"].shape[0]
    for layer_p in params["lstm"]:
        outs = []
        for dname, rev in (("fwd", False), ("bwd", True)):
            p = layer_p[dname]
            h = jnp.zeros((B, H), jnp.float32)
            c = jnp.zeros((B, H), jnp.float32)
            hs = [None] * T
            order = range(T - 1, -1, -1) if rev else range(T)
            for t in order:
                g = x[t] @ p["w_ih"] + h @ p["w_hh"] + p["b"]
                i_g = jax.nn.sigmoid(g[:, :H])
                f_g = jax.nn.sigmoid(g[:, H:2 * H])
                g_g = jnp.tanh(g[:, 2 * H:3 * H])
                o_g = jax.nn.sigmoid(g[:, 3 * H:])
                c = f_g * c + i_g * g_g
                h = o_g * jnp.tanh(c)
                hs[t] = h
            outs.append(jnp.stack(hs, axis=0))
        x = jnp.concatenate(outs, axis=-1)                        # [T, B, 2H]
    x_flat = jnp.transpose(x, (1, 0, 2)).reshape(tokens.shape[0], -1)
    return x_flat @ params["fc_w"] + params["fc_b"]


# ----------------------------------------------------------------------------
# Main
# ----------------------------------------------------------------------------
if __name__ == "__main__":
    BLOCK_SIZE = 8      # sequence length T
    VOCAB_SIZE = 32
    EMBEDDING_DIM = 16
    HIDDEN_DIM = 32
    NUM_LAYERS = 2
    BATCH = 2

    key = jax.random.PRNGKey(0)
    pkey, dkey = jax.random.split(key)

    params = init_params(pkey,
                         block_size=BLOCK_SIZE,
                         vocab_size=VOCAB_SIZE,
                         embedding_dim=EMBEDDING_DIM,
                         hidden_dim=HIDDEN_DIM,
                         num_layers=NUM_LAYERS)

    tokens = jax.random.randint(dkey, (BATCH, BLOCK_SIZE), 0, VOCAB_SIZE,
                                dtype=jnp.int32)

    logits = jax.jit(lstm_char_model_forward)(params, tokens)
    logits = jax.block_until_ready(logits)

    assert logits.shape == (BATCH, VOCAB_SIZE), logits.shape
    assert bool(jnp.all(jnp.isfinite(logits)))

    ref = jax.block_until_ready(jax.jit(reference_forward)(params, tokens))
    max_err = float(jnp.max(jnp.abs(logits - ref)))
    assert max_err < 5e-2, f"mismatch vs reference: max abs err {max_err}"

    print("KERNEL_OK")
</pallas_src>

<mosaic_0001>
module attributes {stable_mosaic.version = 11 : i64} {
  func.func @_fused_lstm_char_kernel(%arg0: memref<64x1xi32, #tpu.memory_space<vmem>>, %arg1: memref<64x1xi32, #tpu.memory_space<vmem>>, %arg2: memref<32x256xbf16, #tpu.memory_space<vmem>>, %arg3: memref<32x256xbf16, #tpu.memory_space<vmem>>, %arg4: memref<1x256xf32, #tpu.memory_space<vmem>>, %arg5: memref<64x256xbf16, #tpu.memory_space<vmem>>, %arg6: memref<64x256xbf16, #tpu.memory_space<vmem>>, %arg7: memref<64x256xbf16, #tpu.memory_space<vmem>>, %arg8: memref<1x256xf32, #tpu.memory_space<vmem>>, %arg9: memref<64x256xbf16, #tpu.memory_space<vmem>>, %arg10: memref<8x64x128xbf16, #tpu.memory_space<vmem>>, %arg11: memref<1x128xf32, #tpu.memory_space<vmem>>, %arg12: memref<8x128xf32, #tpu.memory_space<vmem>>, %arg13: memref<64x256xf32, #tpu.memory_space<vmem>>) attributes {dimension_semantics = [], scalar_prefetch = 0 : i64, scratch_operands = 1 : i64, tpu.core_type = #tpu.core_type<tc>} {
    %0 = tpu.iota {dimensions = array<i32: 1>} : vector<64x32xi32>
    %c0 = arith.constant 0 : index
    %c0_0 = arith.constant 0 : index
    %1 = vector.load %arg0[%c0, %c0_0] : memref<64x1xi32, #tpu.memory_space<vmem>>, vector<64x1xi32>
    %2 = vector.broadcast %1 : vector<64x1xi32> to vector<64x32xi32>
    %3 = arith.cmpi eq, %2, %0 : vector<64x32xi32>
    %4 = arith.extui %3 : vector<64x32xi1> to vector<64x32xi32>
    %5 = arith.sitofp %4 : vector<64x32xi32> to vector<64x32xf32>
    %6 = arith.truncf %5 : vector<64x32xf32> to vector<64x32xbf16>
    %c0_1 = arith.constant 0 : index
    %c0_2 = arith.constant 0 : index
    %7 = vector.load %arg1[%c0_1, %c0_2] : memref<64x1xi32, #tpu.memory_space<vmem>>, vector<64x1xi32>
    %8 = vector.broadcast %7 : vector<64x1xi32> to vector<64x32xi32>
    %9 = arith.cmpi eq, %8, %0 : vector<64x32xi32>
    %10 = arith.extui %9 : vector<64x32xi1> to vector<64x32xi32>
    %11 = arith.sitofp %10 : vector<64x32xi32> to vector<64x32xf32>
    %12 = arith.truncf %11 : vector<64x32xf32> to vector<64x32xbf16>
    %c0_3 = arith.constant 0 : index
    %c0_4 = arith.constant 0 : index
    %13 = vector.load %arg2[%c0_3, %c0_4] : memref<32x256xbf16, #tpu.memory_space<vmem>>, vector<32x256xbf16>
    %cst = arith.constant dense<0.000000e+00> : vector<64x256xf32>
    %14 = tpu.matmul %6, %13, %cst {dimension_numbers = #tpu.dot_dimension_numbers<[1], [0], [0], [1], [0, 0, 1, 1], [], []>} : vector<64x32xbf16>, vector<32x256xbf16>, vector<64x256xf32> -> vector<64x256xf32>
    %c0_5 = arith.constant 0 : index
    %c0_6 = arith.constant 0 : index
    %15 = vector.load %arg3[%c0_5, %c0_6] : memref<32x256xbf16, #tpu.memory_space<vmem>>, vector<32x256xbf16>
    %cst_7 = arith.constant dense<0.000000e+00> : vector<64x256xf32>
    %16 = tpu.matmul %12, %15, %cst_7 {dimension_numbers = #tpu.dot_dimension_numbers<[1], [0], [0], [1], [0, 0, 1, 1], [], []>} : vector<64x32xbf16>, vector<32x256xbf16>, vector<64x256xf32> -> vector<64x256xf32>
    %17 = arith.addf %14, %16 : vector<64x256xf32>
    %c0_8 = arith.constant 0 : index
    %c0_9 = arith.constant 0 : index
    %18 = vector.load %arg4[%c0_8, %c0_9] : memref<1x256xf32, #tpu.memory_space<vmem>>, vector<1x256xf32>
    %19 = vector.broadcast %18 : vector<1x256xf32> to vector<64x256xf32>
    %20 = arith.addf %17, %19 : vector<64x256xf32>
    %c0_10 = arith.constant 0 : index
    %c0_11 = arith.constant 0 : index
    %21 = vector.load %arg13[%c0_10, %c0_11] : memref<64x256xf32, #tpu.memory_space<vmem>>, vector<64x256xf32>
    tpu.vector_store %arg13[%c0_10, %c0_11], %20 {strides = array<i32>} : memref<64x256xf32, #tpu.memory_space<vmem>>, vector<64x256xf32>,
    %c0_12 = arith.constant 0 : index
    %c0_13 = arith.constant 0 : index
    %22 = vector.load %arg5[%c0_12, %c0_13] : memref<64x256xbf16, #tpu.memory_space<vmem>>, vector<64x256xbf16>
    %c0_14 = arith.constant 0 : index
    %c0_15 = arith.constant 0 : index
    %23 = vector.load %arg13[%c0_14, %c0_15] : memref<64x256xf32, #tpu.memory_space<vmem>>, vector<8x256xf32>
    %24 = arith.negf %23 : vector<8x256xf32>
    %25 = math.exp %24 : vector<8x256xf32>
    %cst_16 = arith.constant 1.000000e+00 : f32
    %26 = vector.broadcast %cst_16 : f32 to vector<8x256xf32>
    %27 = arith.addf %26, %25 : vector<8x256xf32>
    %28 = arith.divf %26, %27 : vector<8x256xf32>
    %29 = vector.extract_strided_slice %28 {offsets = [0, 0], sizes = [8, 64], strides = [1, 1]} : vector<8x256xf32> to vector<8x64xf32>
    %30 = vector.extract_strided_slice %28 {offsets = [0, 128], sizes = [8, 64], strides = [1, 1]} : vector<8x256xf32> to vector<8x64xf32>
    %cst_17 = arith.constant 2.000000e+00 : f32
    %31 = vector.broadcast %cst_17 : f32 to vector<8x64xf32>
    %32 = arith.mulf %31, %30 : vector<8x64xf32>
    %cst_18 = arith.constant 1.000000e+00 : f32
    %33 = vector.broadcast %cst_18 : f32 to vector<8x64xf32>
    %34 = arith.subf %32, %33 : vector<8x64xf32>
    %35 = vector.extract_strided_slice %28 {offsets = [0, 192], sizes = [8, 64], strides = [1, 1]} : vector<8x256xf32> to vector<8x64xf32>
    %36 = arith.mulf %29, %34 : vector<8x64xf32>
    %37 = math.tanh %36 : vector<8x64xf32>
    %38 = arith.mulf %35, %37 : vector<8x64xf32>
    %c8 = arith.constant 8 : index
    %c0_19 = arith.constant 0 : index
    %39 = vector.load %arg13[%c8, %c0_19] : memref<64x256xf32, #tpu.memory_space<vmem>>, vector<8x256xf32>
    %40 = arith.truncf %38 : vector<8x64xf32> to vector<8x64xbf16>
    %cst_20 = arith.constant dense<0.000000e+00> : vector<8x256xf32>
    %41 = tpu.matmul %40, %22, %cst_20 {dimension_numbers = #tpu.dot_dimension_numbers<[1], [0], [0], [1], [0, 0, 1, 1], [], []>} : vector<8x64xbf16>, vector<64x256xbf16>, vector<8x256xf32> -> vector<8x256xf32>
    %42 = arith.addf %39, %41 : vector<8x256xf32>
    %43 = arith.negf %42 : vector<8x256xf32>
    %44 = math.exp %43 : vector<8x256xf32>
    %cst_21 = arith.constant 1.000000e+00 : f32
    %45 = vector.broadcast %cst_21 : f32 to vector<8x256xf32>
    %46 = arith.addf %45, %44 : vector<8x256xf32>
    %47 = arith.divf %45, %46 : vector<8x256xf32>
    %48 = vector.extract_strided_slice %47 {offsets = [0, 0], sizes = [8, 64], strides = [1, 1]} : vector<8x256xf32> to vector<8x64xf32>
    %49 = vector.extract_strided_slice %47 {offsets = [0, 64], sizes = [8, 64], strides = [1, 1]} : vector<8x256xf32> to vector<8x64xf32>
    %50 = vector.extract_strided_slice %47 {offsets = [0, 128], sizes = [8, 64], strides = [1, 1]} : vector<8x256xf32> to vector<8x64xf32>
    %cst_22 = arith.constant 2.000000e+00 : f32
    %51 = vector.broadcast %cst_22 : f32 to vector<8x64xf32>
    %52 = arith.mulf %51, %50 : vector<8x64xf32>
    %cst_23 = arith.constant 1.000000e+00 : f32
    %53 = vector.broadcast %cst_23 : f32 to vector<8x64xf32>
    %54 = arith.subf %52, %53 : vector<8x64xf32>
    %55 = vector.extract_strided_slice %47 {offsets = [0, 192], sizes = [8, 64], strides = [1, 1]} : vector<8x256xf32> to vector<8x64xf32>
    %56 = arith.mulf %49, %36 : vector<8x64xf32>
    %57 = arith.mulf %48, %54 : vector<8x64xf32>
    %58 = arith.addf %56, %57 : vector<8x64xf32>
    %59 = math.tanh %58 : vector<8x64xf32>
    %60 = arith.mulf %55, %59 : vector<8x64xf32>
    %c16 = arith.constant 16 : index
    %c0_24 = arith.constant 0 : index
    %61 = vector.load %arg13[%c16, %c0_24] : memref<64x256xf32, #tpu.memory_space<vmem>>, vector<8x256xf32>
    %62 = arith.truncf %60 : vector<8x64xf32> to vector<8x64xbf16>
    %cst_25 = arith.constant dense<0.000000e+00> : vector<8x256xf32>
    %63 = tpu.matmul %62, %22, %cst_25 {dimension_numbers = #tpu.dot_dimension_numbers<[1], [0], [0], [1], [0, 0, 1, 1], [], []>} : vector<8x64xbf16>, vector<64x256xbf16>, vector<8x256xf32> -> vector<8x256xf32>
    %64 = arith.addf %61, %63 : vector<8x256xf32>
    %65 = arith.negf %64 : vector<8x256xf32>
    %66 = math.exp %65 : vector<8x256xf32>
    %cst_26 = arith.constant 1.000000e+00 : f32
    %67 = vector.broadcast %cst_26 : f32 to vector<8x256xf32>
    %68 = arith.addf %67, %66 : vector<8x256xf32>
    %69 = arith.divf %67, %68 : vector<8x256xf32>
    %70 = vector.extract_strided_slice %69 {offsets = [0, 0], sizes = [8, 64], strides = [1, 1]} : vector<8x256xf32> to vector<8x64xf32>
    %71 = vector.extract_strided_slice %69 {offsets = [0, 64], sizes = [8, 64], strides = [1, 1]} : vector<8x256xf32> to vector<8x64xf32>
    %72 = vector.extract_strided_slice %69 {offsets = [0, 128], sizes = [8, 64], strides = [1, 1]} : vector<8x256xf32> to vector<8x64xf32>
    %cst_27 = arith.constant 2.000000e+00 : f32
    %73 = vector.broadcast %cst_27 : f32 to vector<8x64xf32>
    %74 = arith.mulf %73, %72 : vector<8x64xf32>
    %cst_28 = arith.constant 1.000000e+00 : f32
    %75 = vector.broadcast %cst_28 : f32 to vector<8x64xf32>
    %76 = arith.subf %74, %75 : vector<8x64xf32>
    %77 = vector.extract_strided_slice %69 {offsets = [0, 192], sizes = [8, 64], strides = [1, 1]} : vector<8x256xf32> to vector<8x64xf32>
    %78 = arith.mulf %71, %58 : vector<8x64xf32>
    %79 = arith.mulf %70, %76 : vector<8x64xf32>
    %80 = arith.addf %78, %79 : vector<8x64xf32>
    %81 = math.tanh %80 : vector<8x64xf32>
    %82 = arith.mulf %77, %81 : vector<8x64xf32>
    %c24 = arith.constant 24 : index
    %c0_29 = arith.constant 0 : index
    %83 = vector.load %arg13[%c24, %c0_29] : memref<64x256xf32, #tpu.memory_space<vmem>>, vector<8x256xf32>
    %84 = arith.truncf %82 : vector<8x64xf32> to vector<8x64xbf16>
    %cst_30 = arith.constant dense<0.000000e+00> : vector<8x256xf32>
    %85 = tpu.matmul %84, %22, %cst_30 {dimension_numbers = #tpu.dot_dimension_numbers<[1], [0], [0], [1], [0, 0, 1, 1], [], []>} : vector<8x64xbf16>, vector<64x256xbf16>, vector<8x256xf32> -> vector<8x256xf32>
    %86 = arith.addf %83, %85 : vector<8x256xf32>
    %87 = arith.negf %86 : vector<8x256xf32>
    %88 = math.exp %87 : vector<8x256xf32>
    %cst_31 = arith.constant 1.000000e+00 : f32
    %89 = vector.broadcast %cst_31 : f32 to vector<8x256xf32>
    %90 = arith.addf %89, %88 : vector<8x256xf32>
    %91 = arith.divf %89, %90 : vector<8x256xf32>
    %92 = vector.extract_strided_slice %91 {offsets = [0, 0], sizes = [8, 64], strides = [1, 1]} : vector<8x256xf32> to vector<8x64xf32>
    %93 = vector.extract_strided_slice %91 {offsets = [0, 64], sizes = [8, 64], strides = [1, 1]} : vector<8x256xf32> to vector<8x64xf32>
    %94 = vector.extract_strided_slice %91 {offsets = [0, 128], sizes = [8, 64], strides = [1, 1]} : vector<8x256xf32> to vector<8x64xf32>
    %cst_32 = arith.constant 2.000000e+00 : f32
    %95 = vector.broadcast %cst_32 : f32 to vector<8x64xf32>
    %96 = arith.mulf %95, %94 : vector<8x64xf32>
    %cst_33 = arith.constant 1.000000e+00 : f32
    %97 = vector.broadcast %cst_33 : f32 to vector<8x64xf32>
    %98 = arith.subf %96, %97 : vector<8x64xf32>
    %99 = vector.extract_strided_slice %91 {offsets = [0, 192], sizes = [8, 64], strides = [1, 1]} : vector<8x256xf32> to vector<8x64xf32>
    %100 = arith.mulf %93, %80 : vector<8x64xf32>
    %101 = arith.mulf %92, %98 : vector<8x64xf32>
    %102 = arith.addf %100, %101 : vector<8x64xf32>
    %103 = math.tanh %102 : vector<8x64xf32>
    %104 = arith.mulf %99, %103 : vector<8x64xf32>
    %c32 = arith.constant 32 : index
    %c0_34 = arith.constant 0 : index
    %105 = vector.load %arg13[%c32, %c0_34] : memref<64x256xf32, #tpu.memory_space<vmem>>, vector<8x256xf32>
    %106 = arith.truncf %104 : vector<8x64xf32> to vector<8x64xbf16>
    %cst_35 = arith.constant dense<0.000000e+00> : vector<8x256xf32>
    %107 = tpu.matmul %106, %22, %cst_35 {dimension_numbers = #tpu.dot_dimension_numbers<[1], [0], [0], [1], [0, 0, 1, 1], [], []>} : vector<8x64xbf16>, vector<64x256xbf16>, vector<8x256xf32> -> vector<8x256xf32>
    %108 = arith.addf %105, %107 : vector<8x256xf32>
    %109 = arith.negf %108 : vector<8x256xf32>
    %110 = math.exp %109 : vector<8x256xf32>
    %cst_36 = arith.constant 1.000000e+00 : f32
    %111 = vector.broadcast %cst_36 : f32 to vector<8x256xf32>
    %112 = arith.addf %111, %110 : vector<8x256xf32>
    %113 = arith.divf %111, %112 : vector<8x256xf32>
    %114 = vector.extract_strided_slice %113 {offsets = [0, 0], sizes = [8, 64], strides = [1, 1]} : vector<8x256xf32> to vector<8x64xf32>
    %115 = vector.extract_strided_slice %113 {offsets = [0, 64], sizes = [8, 64], strides = [1, 1]} : vector<8x256xf32> to vector<8x64xf32>
    %116 = vector.extract_strided_slice %113 {offsets = [0, 128], sizes = [8, 64], strides = [1, 1]} : vector<8x256xf32> to vector<8x64xf32>
    %cst_37 = arith.constant 2.000000e+00 : f32
    %117 = vector.broadcast %cst_37 : f32 to vector<8x64xf32>
    %118 = arith.mulf %117, %116 : vector<8x64xf32>
    %cst_38 = arith.constant 1.000000e+00 : f32
    %119 = vector.broadcast %cst_38 : f32 to vector<8x64xf32>
    %120 = arith.subf %118, %119 : vector<8x64xf32>
    %121 = vector.extract_strided_slice %113 {offsets = [0, 192], sizes = [8, 64], strides = [1, 1]} : vector<8x256xf32> to vector<8x64xf32>
    %122 = arith.mulf %115, %102 : vector<8x64xf32>
    %123 = arith.mulf %114, %120 : vector<8x64xf32>
    %124 = arith.addf %122, %123 : vector<8x64xf32>
    %125 = math.tanh %124 : vector<8x64xf32>
    %126 = arith.mulf %121, %125 : vector<8x64xf32>
    %c40 = arith.constant 40 : index
    %c0_39 = arith.constant 0 : index
    %127 = vector.load %arg13[%c40, %c0_39] : memref<64x256xf32, #tpu.memory_space<vmem>>, vector<8x256xf32>
    %128 = arith.truncf %126 : vector<8x64xf32> to vector<8x64xbf16>
    %cst_40 = arith.constant dense<0.000000e+00> : vector<8x256xf32>
    %129 = tpu.matmul %128, %22, %cst_40 {dimension_numbers = #tpu.dot_dimension_numbers<[1], [0], [0], [1], [0, 0, 1, 1], [], []>} : vector<8x64xbf16>, vector<64x256xbf16>, vector<8x256xf32> -> vector<8x256xf32>
    %130 = arith.addf %127, %129 : vector<8x256xf32>
    %131 = arith.negf %130 : vector<8x256xf32>
    %132 = math.exp %131 : vector<8x256xf32>
    %cst_41 = arith.constant 1.000000e+00 : f32
    %133 = vector.broadcast %cst_41 : f32 to vector<8x256xf32>
    %134 = arith.addf %133, %132 : vector<8x256xf32>
    %135 = arith.divf %133, %134 : vector<8x256xf32>
    %136 = vector.extract_strided_slice %135 {offsets = [0, 0], sizes = [8, 64], strides = [1, 1]} : vector<8x256xf32> to vector<8x64xf32>
    %137 = vector.extract_strided_slice %135 {offsets = [0, 64], sizes = [8, 64], strides = [1, 1]} : vector<8x256xf32> to vector<8x64xf32>
    %138 = vector.extract_strided_slice %135 {offsets = [0, 128], sizes = [8, 64], strides = [1, 1]} : vector<8x256xf32> to vector<8x64xf32>
    %cst_42 = arith.constant 2.000000e+00 : f32
    %139 = vector.broadcast %cst_42 : f32 to vector<8x64xf32>
    %140 = arith.mulf %139, %138 : vector<8x64xf32>
    %cst_43 = arith.constant 1.000000e+00 : f32
    %141 = vector.broadcast %cst_43 : f32 to vector<8x64xf32>
    %142 = arith.subf %140, %141 : vector<8x64xf32>
    %143 = vector.extract_strided_slice %135 {offsets = [0, 192], sizes = [8, 64], strides = [1, 1]} : vector<8x256xf32> to vector<8x64xf32>
    %144 = arith.mulf %137, %124 : vector<8x64xf32>
    %145 = arith.mulf %136, %142 : vector<8x64xf32>
    %146 = arith.addf %144, %145 : vector<8x64xf32>
    %147 = math.tanh %146 : vector<8x64xf32>
    %148 = arith.mulf %143, %147 : vector<8x64xf32>
    %c48 = arith.constant 48 : index
    %c0_44 = arith.constant 0 : index
    %149 = vector.load %arg13[%c48, %c0_44] : memref<64x256xf32, #tpu.memory_space<vmem>>, vector<8x256xf32>
    %150 = arith.truncf %148 : vector<8x64xf32> to vector<8x64xbf16>
    %cst_45 = arith.constant dense<0.000000e+00> : vector<8x256xf32>
    %151 = tpu.matmul %150, %22, %cst_45 {dimension_numbers = #tpu.dot_dimension_numbers<[1], [0], [0], [1], [0, 0, 1, 1], [], []>} : vector<8x64xbf16>, vector<64x256xbf16>, vector<8x256xf32> -> vector<8x256xf32>
    %152 = arith.addf %149, %151 : vector<8x256xf32>
    %153 = arith.negf %152 : vector<8x256xf32>
    %154 = math.exp %153 : vector<8x256xf32>
    %cst_46 = arith.constant 1.000000e+00 : f32
    %155 = vector.broadcast %cst_46 : f32 to vector<8x256xf32>
    %156 = arith.addf %155, %154 : vector<8x256xf32>
    %157 = arith.divf %155, %156 : vector<8x256xf32>
    %158 = vector.extract_strided_slice %157 {offsets = [0, 0], sizes = [8, 64], strides = [1, 1]} : vector<8x256xf32> to vector<8x64xf32>
    %159 = vector.extract_strided_slice %157 {offsets = [0, 64], sizes = [8, 64], strides = [1, 1]} : vector<8x256xf32> to vector<8x64xf32>
    %160 = vector.extract_strided_slice %157 {offsets = [0, 128], sizes = [8, 64], strides = [1, 1]} : vector<8x256xf32> to vector<8x64xf32>
    %cst_47 = arith.constant 2.000000e+00 : f32
    %161 = vector.broadcast %cst_47 : f32 to vector<8x64xf32>
    %162 = arith.mulf %161, %160 : vector<8x64xf32>
    %cst_48 = arith.constant 1.000000e+00 : f32
    %163 = vector.broadcast %cst_48 : f32 to vector<8x64xf32>
    %164 = arith.subf %162, %163 : vector<8x64xf32>
    %165 = vector.extract_strided_slice %157 {offsets = [0, 192], sizes = [8, 64], strides = [1, 1]} : vector<8x256xf32> to vector<8x64xf32>
    %166 = arith.mulf %159, %146 : vector<8x64xf32>
    %167 = arith.mulf %158, %164 : vector<8x64xf32>
    %168 = arith.addf %166, %167 : vector<8x64xf32>
    %169 = math.tanh %168 : vector<8x64xf32>
    %170 = arith.mulf %165, %169 : vector<8x64xf32>
    %c56 = arith.constant 56 : index
    %c0_49 = arith.constant 0 : index
    %171 = vector.load %arg13[%c56, %c0_49] : memref<64x256xf32, #tpu.memory_space<vmem>>, vector<8x256xf32>
    %172 = arith.truncf %170 : vector<8x64xf32> to vector<8x64xbf16>
    %cst_50 = arith.constant dense<0.000000e+00> : vector<8x256xf32>
    %173 = tpu.matmul %172, %22, %cst_50 {dimension_numbers = #tpu.dot_dimension_numbers<[1], [0], [0], [1], [0, 0, 1, 1], [], []>} : vector<8x64xbf16>, vector<64x256xbf16>, vector<8x256xf32> -> vector<8x256xf32>
    %174 = arith.addf %171, %173 : vector<8x256xf32>
    %175 = arith.negf %174 : vector<8x256xf32>
    %176 = math.exp %175 : vector<8x256xf32>
    %cst_51 = arith.constant 1.000000e+00 : f32
    %177 = vector.broadcast %cst_51 : f32 to vector<8x256xf32>
    %178 = arith.addf %177, %176 : vector<8x256xf32>
    %179 = arith.divf %177, %178 : vector<8x256xf32>
    %180 = vector.extract_strided_slice %179 {offsets = [0, 0], sizes = [8, 64], strides = [1, 1]} : vector<8x256xf32> to vector<8x64xf32>
    %181 = vector.extract_strided_slice %179 {offsets = [0, 64], sizes = [8, 64], strides = [1, 1]} : vector<8x256xf32> to vector<8x64xf32>
    %182 = vector.extract_strided_slice %179 {offsets = [0, 128], sizes = [8, 64], strides = [1, 1]} : vector<8x256xf32> to vector<8x64xf32>
    %cst_52 = arith.constant 2.000000e+00 : f32
    %183 = vector.broadcast %cst_52 : f32 to vector<8x64xf32>
    %184 = arith.mulf %183, %182 : vector<8x64xf32>
    %cst_53 = arith.constant 1.000000e+00 : f32
    %185 = vector.broadcast %cst_53 : f32 to vector<8x64xf32>
    %186 = arith.subf %184, %185 : vector<8x64xf32>
    %187 = vector.extract_strided_slice %179 {offsets = [0, 192], sizes = [8, 64], strides = [1, 1]} : vector<8x256xf32> to vector<8x64xf32>
    %188 = arith.mulf %181, %168 : vector<8x64xf32>
    %189 = arith.mulf %180, %186 : vector<8x64xf32>
    %190 = arith.addf %188, %189 : vector<8x64xf32>
    %191 = math.tanh %190 : vector<8x64xf32>
    %192 = arith.mulf %187, %191 : vector<8x64xf32>
    %193 = tpu.concatenate %38, %60, %82, %104, %126, %148, %170, %192 in 0 : vector<8x64xf32>, vector<8x64xf32>, vector<8x64xf32>, vector<8x64xf32>, vector<8x64xf32>, vector<8x64xf32>, vector<8x64xf32>, vector<8x64xf32> -> vector<64x64xf32>
    %194 = arith.truncf %193 : vector<64x64xf32> to vector<64x64xbf16>
    %195 = tpu.concatenate %192, %170, %148, %126, %104, %82, %60, %38 in 0 : vector<8x64xf32>, vector<8x64xf32>, vector<8x64xf32>, vector<8x64xf32>, vector<8x64xf32>, vector<8x64xf32>, vector<8x64xf32>, vector<8x64xf32> -> vector<64x64xf32>
    %196 = arith.truncf %195 : vector<64x64xf32> to vector<64x64xbf16>
    %c0_54 = arith.constant 0 : index
    %c0_55 = arith.constant 0 : index
    %197 = vector.load %arg6[%c0_54, %c0_55] : memref<64x256xbf16, #tpu.memory_space<vmem>>, vector<64x256xbf16>
    %cst_56 = arith.constant dense<0.000000e+00> : vector<64x256xf32>
    %198 = tpu.matmul %194, %197, %cst_56 {dimension_numbers = #tpu.dot_dimension_numbers<[1], [0], [0], [1], [0, 0, 1, 1], [], []>} : vector<64x64xbf16>, vector<64x256xbf16>, vector<64x256xf32> -> vector<64x256xf32>
    %c0_57 = arith.constant 0 : index
    %c0_58 = arith.constant 0 : index
    %199 = vector.load %arg7[%c0_57, %c0_58] : memref<64x256xbf16, #tpu.memory_space<vmem>>, vector<64x256xbf16>
    %cst_59 = arith.constant dense<0.000000e+00> : vector<64x256xf32>
    %200 = tpu.matmul %196, %199, %cst_59 {dimension_numbers = #tpu.dot_dimension_numbers<[1], [0], [0], [1], [0, 0, 1, 1], [], []>} : vector<64x64xbf16>, vector<64x256xbf16>, vector<64x256xf32> -> vector<64x256xf32>
    %201 = arith.addf %198, %200 : vector<64x256xf32>
    %c0_60 = arith.constant 0 : index
    %c0_61 = arith.constant 0 : index
    %202 = vector.load %arg8[%c0_60, %c0_61] : memref<1x256xf32, #tpu.memory_space<vmem>>, vector<1x256xf32>
    %203 = vector.broadcast %202 : vector<1x256xf32> to vector<64x256xf32>
    %204 = arith.addf %201, %203 : vector<64x256xf32>
    %c0_62 = arith.constant 0 : index
    %c0_63 = arith.constant 0 : index
    %205 = vector.load %arg13[%c0_62, %c0_63] : memref<64x256xf32, #tpu.memory_space<vmem>>, vector<64x256xf32>
    tpu.vector_store %arg13[%c0_62, %c0_63], %204 {strides = array<i32>} : memref<64x256xf32, #tpu.memory_space<vmem>>, vector<64x256xf32>,
    %c0_64 = arith.constant 0 : index
    %c0_65 = arith.constant 0 : index
    %206 = vector.load %arg9[%c0_64, %c0_65] : memref<64x256xbf16, #tpu.memory_space<vmem>>, vector<64x256xbf16>
    %c0_66 = arith.constant 0 : index
    %c0_67 = arith.constant 0 : index
    %207 = vector.load %arg13[%c0_66, %c0_67] : memref<64x256xf32, #tpu.memory_space<vmem>>, vector<8x256xf32>
    %208 = arith.negf %207 : vector<8x256xf32>
    %209 = math.exp %208 : vector<8x256xf32>
    %cst_68 = arith.constant 1.000000e+00 : f32
    %210 = vector.broadcast %cst_68 : f32 to vector<8x256xf32>
    %211 = arith.addf %210, %209 : vector<8x256xf32>
    %212 = arith.divf %210, %211 : vector<8x256xf32>
    %213 = vector.extract_strided_slice %212 {offsets = [0, 0], sizes = [8, 64], strides = [1, 1]} : vector<8x256xf32> to vector<8x64xf32>
    %214 = vector.extract_strided_slice %212 {offsets = [0, 128], sizes = [8, 64], strides = [1, 1]} : vector<8x256xf32> to vector<8x64xf32>
    %cst_69 = arith.constant 2.000000e+00 : f32
    %215 = vector.broadcast %cst_69 : f32 to vector<8x64xf32>
    %216 = arith.mulf %215, %214 : vector<8x64xf32>
    %cst_70 = arith.constant 1.000000e+00 : f32
    %217 = vector.broadcast %cst_70 : f32 to vector<8x64xf32>
    %218 = arith.subf %216, %217 : vector<8x64xf32>
    %219 = vector.extract_strided_slice %212 {offsets = [0, 192], sizes = [8, 64], strides = [1, 1]} : vector<8x256xf32> to vector<8x64xf32>
    %220 = arith.mulf %213, %218 : vector<8x64xf32>
    %221 = math.tanh %220 : vector<8x64xf32>
    %222 = arith.mulf %219, %221 : vector<8x64xf32>
    %c8_71 = arith.constant 8 : index
    %c0_72 = arith.constant 0 : index
    %223 = vector.load %arg13[%c8_71, %c0_72] : memref<64x256xf32, #tpu.memory_space<vmem>>, vector<8x256xf32>
    %224 = arith.truncf %222 : vector<8x64xf32> to vector<8x64xbf16>
    %cst_73 = arith.constant dense<0.000000e+00> : vector<8x256xf32>
    %225 = tpu.matmul %224, %206, %cst_73 {dimension_numbers = #tpu.dot_dimension_numbers<[1], [0], [0], [1], [0, 0, 1, 1], [], []>} : vector<8x64xbf16>, vector<64x256xbf16>, vector<8x256xf32> -> vector<8x256xf32>
    %226 = arith.addf %223, %225 : vector<8x256xf32>
    %227 = arith.negf %226 : vector<8x256xf32>
    %228 = math.exp %227 : vector<8x256xf32>
    %cst_74 = arith.constant 1.000000e+00 : f32
    %229 = vector.broadcast %cst_74 : f32 to vector<8x256xf32>
    %230 = arith.addf %229, %228 : vector<8x256xf32>
    %231 = arith.divf %229, %230 : vector<8x256xf32>
    %232 = vector.extract_strided_slice %231 {offsets = [0, 0], sizes = [8, 64], strides = [1, 1]} : vector<8x256xf32> to vector<8x64xf32>
    %233 = vector.extract_strided_slice %231 {offsets = [0, 64], sizes = [8, 64], strides = [1, 1]} : vector<8x256xf32> to vector<8x64xf32>
    %234 = vector.extract_strided_slice %231 {offsets = [0, 128], sizes = [8, 64], strides = [1, 1]} : vector<8x256xf32> to vector<8x64xf32>
    %cst_75 = arith.constant 2.000000e+00 : f32
    %235 = vector.broadcast %cst_75 : f32 to vector<8x64xf32>
    %236 = arith.mulf %235, %234 : vector<8x64xf32>
    %cst_76 = arith.constant 1.000000e+00 : f32
    %237 = vector.broadcast %cst_76 : f32 to vector<8x64xf32>
    %238 = arith.subf %236, %237 : vector<8x64xf32>
    %239 = vector.extract_strided_slice %231 {offsets = [0, 192], sizes = [8, 64], strides = [1, 1]} : vector<8x256xf32> to vector<8x64xf32>
    %240 = arith.mulf %233, %220 : vector<8x64xf32>
    %241 = arith.mulf %232, %238 : vector<8x64xf32>
    %242 = arith.addf %240, %241 : vector<8x64xf32>
    %243 = math.tanh %242 : vector<8x64xf32>
    %244 = arith.mulf %239, %243 : vector<8x64xf32>
    %c16_77 = arith.constant 16 : index
    %c0_78 = arith.constant 0 : index
    %245 = vector.load %arg13[%c16_77, %c0_78] : memref<64x256xf32, #tpu.memory_space<vmem>>, vector<8x256xf32>
    %246 = arith.truncf %244 : vector<8x64xf32> to vector<8x64xbf16>
    %cst_79 = arith.constant dense<0.000000e+00> : vector<8x256xf32>
    %247 = tpu.matmul %246, %206, %cst_79 {dimension_numbers = #tpu.dot_dimension_numbers<[1], [0], [0], [1], [0, 0, 1, 1], [], []>} : vector<8x64xbf16>, vector<64x256xbf16>, vector<8x256xf32> -> vector<8x256xf32>
    %248 = arith.addf %245, %247 : vector<8x256xf32>
    %249 = arith.negf %248 : vector<8x256xf32>
    %250 = math.exp %249 : vector<8x256xf32>
    %cst_80 = arith.constant 1.000000e+00 : f32
    %251 = vector.broadcast %cst_80 : f32 to vector<8x256xf32>
    %252 = arith.addf %251, %250 : vector<8x256xf32>
    %253 = arith.divf %251, %252 : vector<8x256xf32>
    %254 = vector.extract_strided_slice %253 {offsets = [0, 0], sizes = [8, 64], strides = [1, 1]} : vector<8x256xf32> to vector<8x64xf32>
    %255 = vector.extract_strided_slice %253 {offsets = [0, 64], sizes = [8, 64], strides = [1, 1]} : vector<8x256xf32> to vector<8x64xf32>
    %256 = vector.extract_strided_slice %253 {offsets = [0, 128], sizes = [8, 64], strides = [1, 1]} : vector<8x256xf32> to vector<8x64xf32>
    %cst_81 = arith.constant 2.000000e+00 : f32
    %257 = vector.broadcast %cst_81 : f32 to vector<8x64xf32>
    %258 = arith.mulf %257, %256 : vector<8x64xf32>
    %cst_82 = arith.constant 1.000000e+00 : f32
    %259 = vector.broadcast %cst_82 : f32 to vector<8x64xf32>
    %260 = arith.subf %258, %259 : vector<8x64xf32>
    %261 = vector.extract_strided_slice %253 {offsets = [0, 192], sizes = [8, 64], strides = [1, 1]} : vector<8x256xf32> to vector<8x64xf32>
    %262 = arith.mulf %255, %242 : vector<8x64xf32>
    %263 = arith.mulf %254, %260 : vector<8x64xf32>
    %264 = arith.addf %262, %263 : vector<8x64xf32>
    %265 = math.tanh %264 : vector<8x64xf32>
    %266 = arith.mulf %261, %265 : vector<8x64xf32>
    %c24_83 = arith.constant 24 : index
    %c0_84 = arith.constant 0 : index
    %267 = vector.load %arg13[%c24_83, %c0_84] : memref<64x256xf32, #tpu.memory_space<vmem>>, vector<8x256xf32>
    %268 = arith.truncf %266 : vector<8x64xf32> to vector<8x64xbf16>
    %cst_85 = arith.constant dense<0.000000e+00> : vector<8x256xf32>
    %269 = tpu.matmul %268, %206, %cst_85 {dimension_numbers = #tpu.dot_dimension_numbers<[1], [0], [0], [1], [0, 0, 1, 1], [], []>} : vector<8x64xbf16>, vector<64x256xbf16>, vector<8x256xf32> -> vector<8x256xf32>
    %270 = arith.addf %267, %269 : vector<8x256xf32>
    %271 = arith.negf %270 : vector<8x256xf32>
    %272 = math.exp %271 : vector<8x256xf32>
    %cst_86 = arith.constant 1.000000e+00 : f32
    %273 = vector.broadcast %cst_86 : f32 to vector<8x256xf32>
    %274 = arith.addf %273, %272 : vector<8x256xf32>
    %275 = arith.divf %273, %274 : vector<8x256xf32>
    %276 = vector.extract_strided_slice %275 {offsets = [0, 0], sizes = [8, 64], strides = [1, 1]} : vector<8x256xf32> to vector<8x64xf32>
    %277 = vector.extract_strided_slice %275 {offsets = [0, 64], sizes = [8, 64], strides = [1, 1]} : vector<8x256xf32> to vector<8x64xf32>
    %278 = vector.extract_strided_slice %275 {offsets = [0, 128], sizes = [8, 64], strides = [1, 1]} : vector<8x256xf32> to vector<8x64xf32>
    %cst_87 = arith.constant 2.000000e+00 : f32
    %279 = vector.broadcast %cst_87 : f32 to vector<8x64xf32>
    %280 = arith.mulf %279, %278 : vector<8x64xf32>
    %cst_88 = arith.constant 1.000000e+00 : f32
    %281 = vector.broadcast %cst_88 : f32 to vector<8x64xf32>
    %282 = arith.subf %280, %281 : vector<8x64xf32>
    %283 = vector.extract_strided_slice %275 {offsets = [0, 192], sizes = [8, 64], strides = [1, 1]} : vector<8x256xf32> to vector<8x64xf32>
    %284 = arith.mulf %277, %264 : vector<8x64xf32>
    %285 = arith.mulf %276, %282 : vector<8x64xf32>
    %286 = arith.addf %284, %285 : vector<8x64xf32>
    %287 = math.tanh %286 : vector<8x64xf32>
    %288 = arith.mulf %283, %287 : vector<8x64xf32>
    %c32_89 = arith.constant 32 : index
    %c0_90 = arith.constant 0 : index
    %289 = vector.load %arg13[%c32_89, %c0_90] : memref<64x256xf32, #tpu.memory_space<vmem>>, vector<8x256xf32>
    %290 = arith.truncf %288 : vector<8x64xf32> to vector<8x64xbf16>
    %cst_91 = arith.constant dense<0.000000e+00> : vector<8x256xf32>
    %291 = tpu.matmul %290, %206, %cst_91 {dimension_numbers = #tpu.dot_dimension_numbers<[1], [0], [0], [1], [0, 0, 1, 1], [], []>} : vector<8x64xbf16>, vector<64x256xbf16>, vector<8x256xf32> -> vector<8x256xf32>
    %292 = arith.addf %289, %291 : vector<8x256xf32>
    %293 = arith.negf %292 : vector<8x256xf32>
    %294 = math.exp %293 : vector<8x256xf32>
    %cst_92 = arith.constant 1.000000e+00 : f32
    %295 = vector.broadcast %cst_92 : f32 to vector<8x256xf32>
    %296 = arith.addf %295, %294 : vector<8x256xf32>
    %297 = arith.divf %295, %296 : vector<8x256xf32>
    %298 = vector.extract_strided_slice %297 {offsets = [0, 0], sizes = [8, 64], strides = [1, 1]} : vector<8x256xf32> to vector<8x64xf32>
    %299 = vector.extract_strided_slice %297 {offsets = [0, 64], sizes = [8, 64], strides = [1, 1]} : vector<8x256xf32> to vector<8x64xf32>
    %300 = vector.extract_strided_slice %297 {offsets = [0, 128], sizes = [8, 64], strides = [1, 1]} : vector<8x256xf32> to vector<8x64xf32>
    %cst_93 = arith.constant 2.000000e+00 : f32
    %301 = vector.broadcast %cst_93 : f32 to vector<8x64xf32>
    %302 = arith.mulf %301, %300 : vector<8x64xf32>
    %cst_94 = arith.constant 1.000000e+00 : f32
    %303 = vector.broadcast %cst_94 : f32 to vector<8x64xf32>
    %304 = arith.subf %302, %303 : vector<8x64xf32>
    %305 = vector.extract_strided_slice %297 {offsets = [0, 192], sizes = [8, 64], strides = [1, 1]} : vector<8x256xf32> to vector<8x64xf32>
    %306 = arith.mulf %299, %286 : vector<8x64xf32>
    %307 = arith.mulf %298, %304 : vector<8x64xf32>
    %308 = arith.addf %306, %307 : vector<8x64xf32>
    %309 = math.tanh %308 : vector<8x64xf32>
    %310 = arith.mulf %305, %309 : vector<8x64xf32>
    %c40_95 = arith.constant 40 : index
    %c0_96 = arith.constant 0 : index
    %311 = vector.load %arg13[%c40_95, %c0_96] : memref<64x256xf32, #tpu.memory_space<vmem>>, vector<8x256xf32>
    %312 = arith.truncf %310 : vector<8x64xf32> to vector<8x64xbf16>
    %cst_97 = arith.constant dense<0.000000e+00> : vector<8x256xf32>
    %313 = tpu.matmul %312, %206, %cst_97 {dimension_numbers = #tpu.dot_dimension_numbers<[1], [0], [0], [1], [0, 0, 1, 1], [], []>} : vector<8x64xbf16>, vector<64x256xbf16>, vector<8x256xf32> -> vector<8x256xf32>
    %314 = arith.addf %311, %313 : vector<8x256xf32>
    %315 = arith.negf %314 : vector<8x256xf32>
    %316 = math.exp %315 : vector<8x256xf32>
    %cst_98 = arith.constant 1.000000e+00 : f32
    %317 = vector.broadcast %cst_98 : f32 to vector<8x256xf32>
    %318 = arith.addf %317, %316 : vector<8x256xf32>
    %319 = arith.divf %317, %318 : vector<8x256xf32>
    %320 = vector.extract_strided_slice %319 {offsets = [0, 0], sizes = [8, 64], strides = [1, 1]} : vector<8x256xf32> to vector<8x64xf32>
    %321 = vector.extract_strided_slice %319 {offsets = [0, 64], sizes = [8, 64], strides = [1, 1]} : vector<8x256xf32> to vector<8x64xf32>
    %322 = vector.extract_strided_slice %319 {offsets = [0, 128], sizes = [8, 64], strides = [1, 1]} : vector<8x256xf32> to vector<8x64xf32>
    %cst_99 = arith.constant 2.000000e+00 : f32
    %323 = vector.broadcast %cst_99 : f32 to vector<8x64xf32>
    %324 = arith.mulf %323, %322 : vector<8x64xf32>
    %cst_100 = arith.constant 1.000000e+00 : f32
    %325 = vector.broadcast %cst_100 : f32 to vector<8x64xf32>
    %326 = arith.subf %324, %325 : vector<8x64xf32>
    %327 = vector.extract_strided_slice %319 {offsets = [0, 192], sizes = [8, 64], strides = [1, 1]} : vector<8x256xf32> to vector<8x64xf32>
    %328 = arith.mulf %321, %308 : vector<8x64xf32>
    %329 = arith.mulf %320, %326 : vector<8x64xf32>
    %330 = arith.addf %328, %329 : vector<8x64xf32>
    %331 = math.tanh %330 : vector<8x64xf32>
    %332 = arith.mulf %327, %331 : vector<8x64xf32>
    %c48_101 = arith.constant 48 : index
    %c0_102 = arith.constant 0 : index
    %333 = vector.load %arg13[%c48_101, %c0_102] : memref<64x256xf32, #tpu.memory_space<vmem>>, vector<8x256xf32>
    %334 = arith.truncf %332 : vector<8x64xf32> to vector<8x64xbf16>
    %cst_103 = arith.constant dense<0.000000e+00> : vector<8x256xf32>
    %335 = tpu.matmul %334, %206, %cst_103 {dimension_numbers = #tpu.dot_dimension_numbers<[1], [0], [0], [1], [0, 0, 1, 1], [], []>} : vector<8x64xbf16>, vector<64x256xbf16>, vector<8x256xf32> -> vector<8x256xf32>
    %336 = arith.addf %333, %335 : vector<8x256xf32>
    %337 = arith.negf %336 : vector<8x256xf32>
    %338 = math.exp %337 : vector<8x256xf32>
    %cst_104 = arith.constant 1.000000e+00 : f32
    %339 = vector.broadcast %cst_104 : f32 to vector<8x256xf32>
    %340 = arith.addf %339, %338 : vector<8x256xf32>
    %341 = arith.divf %339, %340 : vector<8x256xf32>
    %342 = vector.extract_strided_slice %341 {offsets = [0, 0], sizes = [8, 64], strides = [1, 1]} : vector<8x256xf32> to vector<8x64xf32>
    %343 = vector.extract_strided_slice %341 {offsets = [0, 64], sizes = [8, 64], strides = [1, 1]} : vector<8x256xf32> to vector<8x64xf32>
    %344 = vector.extract_strided_slice %341 {offsets = [0, 128], sizes = [8, 64], strides = [1, 1]} : vector<8x256xf32> to vector<8x64xf32>
    %cst_105 = arith.constant 2.000000e+00 : f32
    %345 = vector.broadcast %cst_105 : f32 to vector<8x64xf32>
    %346 = arith.mulf %345, %344 : vector<8x64xf32>
    %cst_106 = arith.constant 1.000000e+00 : f32
    %347 = vector.broadcast %cst_106 : f32 to vector<8x64xf32>
    %348 = arith.subf %346, %347 : vector<8x64xf32>
    %349 = vector.extract_strided_slice %341 {offsets = [0, 192], sizes = [8, 64], strides = [1, 1]} : vector<8x256xf32> to vector<8x64xf32>
    %350 = arith.mulf %343, %330 : vector<8x64xf32>
    %351 = arith.mulf %342, %348 : vector<8x64xf32>
    %352 = arith.addf %350, %351 : vector<8x64xf32>
    %353 = math.tanh %352 : vector<8x64xf32>
    %354 = arith.mulf %349, %353 : vector<8x64xf32>
    %c56_107 = arith.constant 56 : index
    %c0_108 = arith.constant 0 : index
    %355 = vector.load %arg13[%c56_107, %c0_108] : memref<64x256xf32, #tpu.memory_space<vmem>>, vector<8x256xf32>
    %356 = arith.truncf %354 : vector<8x64xf32> to vector<8x64xbf16>
    %cst_109 = arith.constant dense<0.000000e+00> : vector<8x256xf32>
    %357 = tpu.matmul %356, %206, %cst_109 {dimension_numbers = #tpu.dot_dimension_numbers<[1], [0], [0], [1], [0, 0, 1, 1], [], []>} : vector<8x64xbf16>, vector<64x256xbf16>, vector<8x256xf32> -> vector<8x256xf32>
    %358 = arith.addf %355, %357 : vector<8x256xf32>
    %359 = arith.negf %358 : vector<8x256xf32>
    %360 = math.exp %359 : vector<8x256xf32>
    %cst_110 = arith.constant 1.000000e+00 : f32
    %361 = vector.broadcast %cst_110 : f32 to vector<8x256xf32>
    %362 = arith.addf %361, %360 : vector<8x256xf32>
    %363 = arith.divf %361, %362 : vector<8x256xf32>
    %364 = vector.extract_strided_slice %363 {offsets = [0, 0], sizes = [8, 64], strides = [1, 1]} : vector<8x256xf32> to vector<8x64xf32>
    %365 = vector.extract_strided_slice %363 {offsets = [0, 64], sizes = [8, 64], strides = [1, 1]} : vector<8x256xf32> to vector<8x64xf32>
    %366 = vector.extract_strided_slice %363 {offsets = [0, 128], sizes = [8, 64], strides = [1, 1]} : vector<8x256xf32> to vector<8x64xf32>
    %cst_111 = arith.constant 2.000000e+00 : f32
    %367 = vector.broadcast %cst_111 : f32 to vector<8x64xf32>
    %368 = arith.mulf %367, %366 : vector<8x64xf32>
    %cst_112 = arith.constant 1.000000e+00 : f32
    %369 = vector.broadcast %cst_112 : f32 to vector<8x64xf32>
    %370 = arith.subf %368, %369 : vector<8x64xf32>
    %371 = vector.extract_strided_slice %363 {offsets = [0, 192], sizes = [8, 64], strides = [1, 1]} : vector<8x256xf32> to vector<8x64xf32>
    %372 = arith.mulf %365, %352 : vector<8x64xf32>
    %373 = arith.mulf %364, %370 : vector<8x64xf32>
    %374 = arith.addf %372, %373 : vector<8x64xf32>
    %375 = math.tanh %374 : vector<8x64xf32>
    %376 = arith.mulf %371, %375 : vector<8x64xf32>
    %c0_113 = arith.constant 0 : index
    %c0_114 = arith.constant 0 : index
    %377 = vector.load %arg11[%c0_113, %c0_114] : memref<1x128xf32, #tpu.memory_space<vmem>>, vector<1x128xf32>
    %378 = vector.shape_cast %377 : vector<1x128xf32> to vector<1x128xf32>
    %379 = vector.broadcast %378 : vector<1x128xf32> to vector<8x128xf32>
    %380 = arith.truncf %222 : vector<8x64xf32> to vector<8x64xbf16>
    %c0_115 = arith.constant 0 : index
    %c0_116 = arith.constant 0 : index
    %c0_117 = arith.constant 0 : index
    %381 = vector.load %arg10[%c0_115, %c0_116, %c0_117] : memref<8x64x128xbf16, #tpu.memory_space<vmem>>, vector<1x64x128xbf16>
    %382 = vector.shape_cast %381 : vector<1x64x128xbf16> to vector<64x128xbf16>
    %cst_118 = arith.constant dense<0.000000e+00> : vector<8x128xf32>
    %383 = tpu.matmul %380, %382, %cst_118 {dimension_numbers = #tpu.dot_dimension_numbers<[1], [0], [0], [1], [0, 0, 1, 1], [], []>} : vector<8x64xbf16>, vector<64x128xbf16>, vector<8x128xf32> -> vector<8x128xf32>
    %384 = arith.addf %379, %383 : vector<8x128xf32>
    %385 = arith.truncf %244 : vector<8x64xf32> to vector<8x64xbf16>
    %c1 = arith.constant 1 : index
    %c0_119 = arith.constant 0 : index
    %c0_120 = arith.constant 0 : index
    %386 = vector.load %arg10[%c1, %c0_119, %c0_120] : memref<8x64x128xbf16, #tpu.memory_space<vmem>>, vector<1x64x128xbf16>
    %387 = vector.shape_cast %386 : vector<1x64x128xbf16> to vector<64x128xbf16>
    %cst_121 = arith.constant dense<0.000000e+00> : vector<8x128xf32>
    %388 = tpu.matmul %385, %387, %cst_121 {dimension_numbers = #tpu.dot_dimension_numbers<[1], [0], [0], [1], [0, 0, 1, 1], [], []>} : vector<8x64xbf16>, vector<64x128xbf16>, vector<8x128xf32> -> vector<8x128xf32>
    %389 = arith.addf %384, %388 : vector<8x128xf32>
    %390 = arith.truncf %266 : vector<8x64xf32> to vector<8x64xbf16>
    %c2 = arith.constant 2 : index
    %c0_122 = arith.constant 0 : index
    %c0_123 = arith.constant 0 : index
    %391 = vector.load %arg10[%c2, %c0_122, %c0_123] : memref<8x64x128xbf16, #tpu.memory_space<vmem>>, vector<1x64x128xbf16>
    %392 = vector.shape_cast %391 : vector<1x64x128xbf16> to vector<64x128xbf16>
    %cst_124 = arith.constant dense<0.000000e+00> : vector<8x128xf32>
    %393 = tpu.matmul %390, %392, %cst_124 {dimension_numbers = #tpu.dot_dimension_numbers<[1], [0], [0], [1], [0, 0, 1, 1], [], []>} : vector<8x64xbf16>, vector<64x128xbf16>, vector<8x128xf32> -> vector<8x128xf32>
    %394 = arith.addf %389, %393 : vector<8x128xf32>
    %395 = arith.truncf %288 : vector<8x64xf32> to vector<8x64xbf16>
    %c3 = arith.constant 3 : index
    %c0_125 = arith.constant 0 : index
    %c0_126 = arith.constant 0 : index
    %396 = vector.load %arg10[%c3, %c0_125, %c0_126] : memref<8x64x128xbf16, #tpu.memory_space<vmem>>, vector<1x64x128xbf16>
    %397 = vector.shape_cast %396 : vector<1x64x128xbf16> to vector<64x128xbf16>
    %cst_127 = arith.constant dense<0.000000e+00> : vector<8x128xf32>
    %398 = tpu.matmul %395, %397, %cst_127 {dimension_numbers = #tpu.dot_dimension_numbers<[1], [0], [0], [1], [0, 0, 1, 1], [], []>} : vector<8x64xbf16>, vector<64x128xbf16>, vector<8x128xf32> -> vector<8x128xf32>
    %399 = arith.addf %394, %398 : vector<8x128xf32>
    %400 = arith.truncf %310 : vector<8x64xf32> to vector<8x64xbf16>
    %c4 = arith.constant 4 : index
    %c0_128 = arith.constant 0 : index
    %c0_129 = arith.constant 0 : index
    %401 = vector.load %arg10[%c4, %c0_128, %c0_129] : memref<8x64x128xbf16, #tpu.memory_space<vmem>>, vector<1x64x128xbf16>
    %402 = vector.shape_cast %401 : vector<1x64x128xbf16> to vector<64x128xbf16>
    %cst_130 = arith.constant dense<0.000000e+00> : vector<8x128xf32>
    %403 = tpu.matmul %400, %402, %cst_130 {dimension_numbers = #tpu.dot_dimension_numbers<[1], [0], [0], [1], [0, 0, 1, 1], [], []>} : vector<8x64xbf16>, vector<64x128xbf16>, vector<8x128xf32> -> vector<8x128xf32>
    %404 = arith.addf %399, %403 : vector<8x128xf32>
    %405 = arith.truncf %332 : vector<8x64xf32> to vector<8x64xbf16>
    %c5 = arith.constant 5 : index
    %c0_131 = arith.constant 0 : index
    %c0_132 = arith.constant 0 : index
    %406 = vector.load %arg10[%c5, %c0_131, %c0_132] : memref<8x64x128xbf16, #tpu.memory_space<vmem>>, vector<1x64x128xbf16>
    %407 = vector.shape_cast %406 : vector<1x64x128xbf16> to vector<64x128xbf16>
    %cst_133 = arith.constant dense<0.000000e+00> : vector<8x128xf32>
    %408 = tpu.matmul %405, %407, %cst_133 {dimension_numbers = #tpu.dot_dimension_numbers<[1], [0], [0], [1], [0, 0, 1, 1], [], []>} : vector<8x64xbf16>, vector<64x128xbf16>, vector<8x128xf32> -> vector<8x128xf32>
    %409 = arith.addf %404, %408 : vector<8x128xf32>
    %410 = arith.truncf %354 : vector<8x64xf32> to vector<8x64xbf16>
    %c6 = arith.constant 6 : index
    %c0_134 = arith.constant 0 : index
    %c0_135 = arith.constant 0 : index
    %411 = vector.load %arg10[%c6, %c0_134, %c0_135] : memref<8x64x128xbf16, #tpu.memory_space<vmem>>, vector<1x64x128xbf16>
    %412 = vector.shape_cast %411 : vector<1x64x128xbf16> to vector<64x128xbf16>
    %cst_136 = arith.constant dense<0.000000e+00> : vector<8x128xf32>
    %413 = tpu.matmul %410, %412, %cst_136 {dimension_numbers = #tpu.dot_dimension_numbers<[1], [0], [0], [1], [0, 0, 1, 1], [], []>} : vector<8x64xbf16>, vector<64x128xbf16>, vector<8x128xf32> -> vector<8x128xf32>
    %414 = arith.addf %409, %413 : vector<8x128xf32>
    %415 = arith.truncf %376 : vector<8x64xf32> to vector<8x64xbf16>
    %c7 = arith.constant 7 : index
    %c0_137 = arith.constant 0 : index
    %c0_138 = arith.constant 0 : index
    %416 = vector.load %arg10[%c7, %c0_137, %c0_138] : memref<8x64x128xbf16, #tpu.memory_space<vmem>>, vector<1x64x128xbf16>
    %417 = vector.shape_cast %416 : vector<1x64x128xbf16> to vector<64x128xbf16>
    %cst_139 = arith.constant dense<0.000000e+00> : vector<8x128xf32>
    %418 = tpu.matmul %415, %417, %cst_139 {dimension_numbers = #tpu.dot_dimension_numbers<[1], [0], [0], [1], [0, 0, 1, 1], [], []>} : vector<8x64xbf16>, vector<64x128xbf16>, vector<8x128xf32> -> vector<8x128xf32>
    %419 = arith.addf %414, %418 : vector<8x128xf32>
    %c0_140 = arith.constant 0 : index
    %c0_141 = arith.constant 0 : index
    %420 = vector.load %arg12[%c0_140, %c0_141] : memref<8x128xf32, #tpu.memory_space<vmem>>, vector<8x128xf32>
    tpu.vector_store %arg12[%c0_140, %c0_141], %419 {strides = array<i32>} : memref<8x128xf32, #tpu.memory_space<vmem>>, vector<8x128xf32>,
    return
  }
}

</mosaic_0001>

<bundles_post_ra>
// kernel: lstm_char_model_forward.1
= control target key start
LH: loop header
LB: loop body
LE: loop exit
PB: predicated region body
PF: predicated region fallthrough
CT: control target
= control target key end

     0   :  { %v3205_v0 = vmov 0   ;;  %v42_v16 = vlaneseq  ;;  %vm192_vm4 = vcmask 261120   ;;  %v3206_v22 = vmov 0.0   ;;  %s4153_s1 = inlined_call_operand.vmem [shape: s32[64,1], index: 1, kind: input, shape index: {}]   ;;  %s4154_s0 = inlined_call_operand.vmem [shape: s32[64,1], index: 0, kind: input, shape index: {}]   ;;  %s4155_s3 = inlined_call_operand.vmem [shape: bf16[32,256], index: 3, kind: input, shape index: {}]   ;;  %s4156_s2 = inlined_call_operand.vmem [shape: bf16[32,256], index: 2, kind: input, shape index: {}]   ;;  %s4157_s4 = inlined_call_operand.vmem [shape: f32[1,256], index: 4, kind: input, shape index: {}]   ;;  %s4158_s5 = inlined_call_operand.vmem [shape: bf16[64,256], index: 5, kind: input, shape index: {}]   ;;  %s4159_s6 = inlined_call_operand.vmem [shape: bf16[64,256], index: 6, kind: input, shape index: {}]   ;;  %s4160_s7 = inlined_call_operand.vmem [shape: bf16[64,256], index: 7, kind: input, shape index: {}]   ;;  %s4161_s8 = inlined_call_operand.vmem [shape: f32[1,256], index: 8, kind: input, shape index: {}]   ;;  %s4162_s9 = inlined_call_operand.vmem [shape: bf16[64,256], index: 9, kind: input, shape index: {}]   ;;  %s4163_s10 = inlined_call_operand.vmem [shape: bf16[8,64,128], index: 10, kind: input, shape index: {}]   ;;  %s4164_s11 = inlined_call_operand.vmem [shape: f32[1,128], index: 11, kind: input, shape index: {}]   ;;  %s4165_s12 = inlined_call_operand.vmem [shape: f32[8,128], index: 12, kind: output, shape index: {}]  }
   0x1   :  { %2952 = vset.pattern.permute.xlu1 %v3205_v0  ;;  %2951 = vset.pattern.permute.xlu0 %v3205_v0  ;;  %v104_v1 = vld [vmem:[%s4153_s1] sm:$0xff]  ;;  %v105_v3 = vld [vmem:[%s4153_s1 + $0x8] sm:$0xff]  ;;  %v2953_v5 = vld [vmem:[%s4155_s3 + $0x14] ss:$8 sps:$4 sm:$0xff]   ;;  %vm504_vm11 = vcmask 523264  }
   0x2   :  { %v44_v2 = vld [vmem:[%s4154_s0] sm:$0xff]  ;;  %113 = vperm.xlu1 %2952, %v104_v1   ;;  %v45_v4 = vld [vmem:[%s4154_s0 + $0x8] sm:$0xff]  ;;  %237 = vmatprep.mubr.bf16.mxu0 %v3205_v0  ;;  %v106_v6 = vld [vmem:[%s4153_s1 + $0x10] sm:$0xff]  ;;  %v3323_v17 = vand.u32 127, %v42_v16  ;;  %v3337_v29 = vshrl.u32 %v42_v16, 7 }
   0x3   :  { %53 = vperm.xlu0 %2951, %v44_v2   ;;  %342 = vmatprep.mubr.bf16.mxu1 %v3205_v0  ;;  %v2955_v7 = vld [vmem:[%s4156_s2 + $0x14] ss:$8 sps:$4 sm:$0xff]   ;;  %v2957_v8 = vld [vmem:[%s4155_s3 + $0x10] ss:$8 sps:$4 sm:$0xff]   ;;  %v2959_v10 = vld [vmem:[%s4155_s3 + $0x4] ss:$8 sps:$4 sm:$0xff]  }
   0x4   :  { %v2958_v9 = vld [vmem:[%s4156_s2 + $0x10] ss:$8 sps:$4 sm:$0xff]   ;;  %217 = vmatprep.subr.bf16.mxu0 %v2953_v5  ;;  %322 = vmatprep.subr.bf16.mxu1 %v2955_v7  ;;  %v2961_v11 = vld [vmem:[%s4156_s2 + $0x4] ss:$8 sps:$4 sm:$0xff]   ;;  %v2963_v12 = vld [vmem:[%s4155_s3] ss:$8 sps:$4 sm:$0xff]  }
   0x5   :  { %218 = vmatpush1.bf16.msra.mxu0 %v2957_v8  ;;  %323 = vmatpush1.bf16.msra.mxu1 %v2958_v9  ;;  %v2964_v13 = vld [vmem:[%s4156_s2] ss:$8 sps:$4 sm:$0xff]   ;;  %v110_v15 = vld [vmem:[%s4153_s1 + $0x30] sm:$0xff]  ;;  %v387_v30 = vsub.s32 0, %v3337_v29  ;;  %v391_v32 = vsub.s32 1, %v3337_v29  ;;  %v107_v55 = vld [vmem:[%s4153_s1 + $0x18] sm:$0xff] }
   0x6   :  { %116 = vperm.xlu1 %2952, %v105_v3   ;;  %219 = vmatprep.subr.bf16.mxu0 %v2959_v10  ;;  %v108_v14 = vld [vmem:[%s4153_s1 + $0x20] sm:$0xff]  ;;  %v109_v56 = vld [vmem:[%s4153_s1 + $0x28] sm:$0xff]  ;;  %v111_v57 = vld [vmem:[%s4153_s1 + $0x38] sm:$0xff] }
   0x7   :  { %56 = vperm.xlu0 %2951, %v45_v4   ;;  %324 = vmatprep.subr.bf16.mxu1 %v2961_v11  ;;  %v383_v31 = vld [vmem:[%s4157_s4] sm:$0x3]  ;;  %s3207_s4 = smov 64   ;;  %v46_v58 = vld [vmem:[%s4154_s0 + $0x10] sm:$0xff]  ;;  %v3388_v63 = vld [vmem:[%s4158_s5 + $0x24] ss:$8 sps:$4 sm:$0xff]  }
   0x8   :  { %v3346_v33 = vrot.slane %v383_v31, %v387_v30  ;;  %v3350_v37 = vrot.slane %v383_v31, %v391_v32  ;;  %v48_v59 = vld [vmem:[%s4154_s0 + $0x20] sm:$0xff]  ;;  %v50_v60 = vld [vmem:[%s4154_s0 + $0x30] sm:$0xff] }
   0x9   :  { %220 = vmatpush1.bf16.msra.mxu0 %v2963_v12  ;;  %325 = vmatpush1.bf16.msra.mxu1 %v2964_v13  ;;  %v3377_v61 = vld [vmem:[%s4158_s5 + $0x34] ss:$8 sps:$4 sm:$0xff]   ;;  %v3382_v62 = vld [vmem:[%s4158_s5 + $0x30] ss:$8 sps:$4 sm:$0xff]   ;;  %v3394_v1 = vld [vmem:[%s4158_s5 + $0x20] ss:$8 sps:$4 sm:$0xff]  }
   0xa   :  { %119 = vperm.xlu1 %2952, %v106_v6   ;;  %516 = vmatprep.subr.bf16.mxu0 %v3377_v61  ;;  %v3401_v2 = vld [vmem:[%s4158_s5 + $0x14] ss:$8 sps:$4 sm:$0xff]   ;;  %v3409_v3 = vld [vmem:[%s4158_s5 + $0x10] ss:$8 sps:$4 sm:$0xff]   ;;  %v3415_v4 = vld [vmem:[%s4158_s5 + $0x4] ss:$8 sps:$4 sm:$0xff]  }
   0xb   :  { %595 = vmatprep.subr.bf16.mxu1 %v3377_v61  ;;  %v3423_v5 = vld [vmem:[%s4158_s5] ss:$8 sps:$4 sm:$0xff]  }
   0xe   :  { %125 = vperm.xlu1 %2952, %v108_v14  }
  0x12   :  { %131 = vperm.xlu1 %2952, %v110_v15  }
  0x7d   :  { %v114_v18 = vpop.permute.xlu1 %113 }
  0x7e   :  { %v54_v19 = vpop.permute.xlu0 %53  ;;  %vm136_vm0 = vcmp.eq.s32.totalorder %v114_v18, %v3323_v17 }
  0x7f   :  { %vm76_vm1 = vcmp.eq.s32.totalorder %v54_v19, %v3323_v17  ;;  %v2588_v23 = vsel %vm136_vm0, 1.0, %v3206_v22 }
  0x80   :  { %v2580_v24 = vsel %vm76_vm1, 1.0, %v3206_v22 }
  0x81   :  { %v117_v20 = vpop.permute.xlu1 %116 }
  0x82   :  { %v57_v21 = vpop.permute.xlu0 %56  ;;  %vm137_vm2 = vcmp.eq.s32.totalorder %v117_v20, %v3323_v17 }
  0x83   :  { %vm77_vm3 = vcmp.eq.s32.totalorder %v57_v21, %v3323_v17  ;;  %v2589_v25 = vsel %vm137_vm2, 1.0, %v3206_v22  ;;  %vm3208_vm2 = vmmov 0  }
  0x84   :  { %v2581_v26 = vsel %vm77_vm3, 1.0, %v3206_v22  ;;  %v160_v27 = vpack.c.bf16 %v2589_v25, %v2588_v23 }
  0x85   :  { %v100_v28 = vpack.c.bf16 %v2581_v26, %v2580_v24  ;;  %v120_v9 = vpop.permute.xlu1 %119 }
  0x86   :  { %2600 = vmatmul.mubr.msk.bf16.vlgmr.msra.gmra.mxu0 %vm192_vm4, %v160_v27  ;;  %vm138_vm5 = vcmp.eq.s32.totalorder %v120_v9, %v3323_v17 }
  0x87   :  { %2608 = vmatmul.mubr.msk.bf16.vlgmr.msra.gmra.mxu1 %vm192_vm4, %v100_v28  ;;  %247 = vmatprep.mubr.bf16.mxu0 %v3205_v0  ;;  %v2590_v11 = vsel %vm138_vm5, 1.0, %v3206_v22 }
  0x88   :  { %352 = vmatprep.mubr.bf16.mxu1 %v3205_v0  ;;  %517 = vmatpush1.bf16.msra.mxu0 %v3382_v62 }
  0x89   :  { %518 = vmatprep.subr.bf16.mxu0 %v3388_v63  ;;  %596 = vmatpush1.bf16.msra.mxu1 %v3382_v62  ;;  %v126_v14 = vpop.permute.xlu1 %125 }
  0x8a   :  { %597 = vmatprep.subr.bf16.mxu1 %v3388_v63  ;;  %vm140_vm8 = vcmp.eq.s32.totalorder %v126_v14, %v3323_v17 }
  0x8b   :  { %v2592_v18 = vsel %vm140_vm8, 1.0, %v3206_v22 }
  0x8c   :  { %519 = vmatpush1.bf16.msra.mxu0 %v3394_v1 }
  0x8d   :  { %520 = vmatprep.subr.bf16.mxu0 %v3401_v2  ;;  %598 = vmatpush1.bf16.msra.mxu1 %v3394_v1  ;;  %v132_v21 = vpop.permute.xlu1 %131 }
  0x8e   :  { %599 = vmatprep.subr.bf16.mxu1 %v3401_v2  ;;  %vm142_vm10 = vcmp.eq.s32.totalorder %v132_v21, %v3323_v17 }
  0x8f   :  { %v2594_v24 = vsel %vm142_vm10, 1.0, %v3206_v22 }
  0x90   :  { %521 = vmatpush1.bf16.msra.mxu0 %v3409_v3 }
  0x91   :  { %522 = vmatprep.subr.bf16.mxu0 %v3415_v4  ;;  %600 = vmatpush1.bf16.msra.mxu1 %v3409_v3 }
  0x92   :  { %601 = vmatprep.subr.bf16.mxu1 %v3415_v4 }
  0x94   :  { %523 = vmatpush1.bf16.msra.mxu0 %v3423_v5 }
  0x95   :  { %602 = vmatpush1.bf16.msra.mxu1 %v3423_v5  ;;  %670 = vmatprep.subr.bf16.mxu0 %v3377_v61 }
  0x96   :  { %745 = vmatprep.subr.bf16.mxu1 %v3377_v61 }
 0x146   :  { %v239_v34 = vpop.f32.mrf.mxu0 }
 0x147   :  { %v344_v35 = vpop.f32.mrf.mxu1 }
 0x148   :  { %v345_v36 = vadd.f32 %v344_v35, %v239_v34  ;;  %v241_v38 = vpop.f32.mrf.mxu0 }
 0x149   :  { %v346_v39 = vpop.f32.mrf.mxu1 }
 0x14a   :  { %v395_v40 = vadd.f32 %v3346_v33, %v345_v36  ;;  %v347_v41 = vadd.f32 %v346_v39, %v241_v38  ;;  %v243_v27 = vpop.f32.mrf.mxu0 }
 0x14c   :  { %v2612_v42 = vmul.f32 -1.442695, %v395_v40  ;;  %v396_v43 = vadd.f32 %v3350_v37, %v347_v41  ;;  %v245_v28 = vpop.f32.mrf.mxu0 }
 0x14e   :  { %v2613_v44 = vmul.f32 -1.442695, %v396_v43  ;;  %3045 = vpow2.f32 %v2612_v42  ;;  %v348_v43 = vpop.f32.mrf.mxu1 }
 0x150   :  { %3047 = vpow2.f32 %v2613_v44 }
 0x15b   :  { %v3046_v45 = vpop.eup %3045 }
 0x15c   :  { %v443_v48 = vadd.f32 1.0, %v3046_v45  ;;  %v350_v45 = vpop.f32.mrf.mxu1 }
 0x15d   :  { %v3048_v46 = vpop.eup %3047 }
 0x15e   :  { %v444_v47 = vadd.f32 1.0, %v3048_v46 }
 0x160   :  { %3049 = vrcp.f32 %v444_v47  ;;  %v349_v47 = vadd.f32 %v348_v43, %v243_v27 }
 0x161   :  { %3051 = vrcp.f32 %v443_v48  ;;  %v351_v48 = vadd.f32 %v350_v45, %v245_v28 }
 0x16d   :  { %v3050_v49 = vpop.eup %3049 }
 0x16e   :  { %v449_v50 = vmul.f32 2.0, %v3050_v49  ;;  %v3052_v52 = vpop.eup %3051 }
 0x170   :  { %v2614_v51 = vadd.f32 -1.0, %v449_v50  ;;  %v397_v50 = vadd.f32 %v3346_v33, %v349_v47 }
 0x172   :  { %v451_v53 = vmul.f32 %v3052_v52, %v2614_v51 }
 0x174   :  { %3053 = vtanh.f32 %v451_v53 }
 0x181   :  { %v3054_v54 = vpop.eup %3053 }
 0x182   :  { %454 = vrot.lane.b32.xlu0 %v3054_v54, %s3207_s4 }
 0x186   :  { %122 = vperm.xlu0 %2951, %v107_v55  }
 0x18a   :  { %128 = vperm.xlu0 %2951, %v109_v56  }
 0x18e   :  { %134 = vperm.xlu0 %2951, %v111_v57  }
 0x192   :  { %566 = vrot.lane.b32.xlu0 %v451_v53, %s3207_s4  ;;  %v398_v53 = vadd.f32 %v3350_v37, %v351_v48 }
 0x196   :  { %59 = vperm.xlu0 %2951, %v46_v58  }
 0x19a   :  { %65 = vperm.xlu0 %2951, %v48_v59  }
 0x19e   :  { %71 = vperm.xlu0 %2951, %v50_v60  }
 0x1f4   :  { %v455_v6 = vpop.permute.xlu0 %454 }
 0x1f5   :  { %v3432_v7 = vmul.f32 %v3050_v49, %v455_v6 }
 0x1f7   :  { %v460_v8 = vpack.c.bf16 %v3432_v7, %v3432_v7 }
 0x1f9   :  { %462 = vrot.lane.b32.xlu1 %v460_v8, %s3207_s4 }
 0x201   :  { %v123_v10 = vpop.permute.xlu0 %122 }
 0x202   :  { %vm139_vm6 = vcmp.eq.s32.totalorder %v123_v10, %v3323_v17 }
 0x203   :  { %v2591_v12 = vsel %vm139_vm6, 1.0, %v3206_v22 }
 0x204   :  { %v161_v13 = vpack.c.bf16 %v2591_v12, %v2590_v11 }
 0x205   :  { %v129_v15 = vpop.permute.xlu0 %128 }
 0x206   :  { %vm141_vm7 = vcmp.eq.s32.totalorder %v129_v15, %v3323_v17  ;;  %2601 = vmatmul.mubr.msk.bf16.gmra.mxu0 %vm192_vm4, %v161_v13  ;;  %v47_v15 = vld [vmem:[%s4154_s0 + $0x18] sm:$0xff] }
 0x207   :  { %257 = vmatprep.mubr.bf16.mxu0 %v3205_v0  ;;  %v2593_v16 = vsel %vm141_vm7, 1.0, %v3206_v22 }
 0x208   :  { %v162_v20 = vpack.c.bf16 %v2593_v16, %v2592_v18  ;;  %v49_v16 = vld [vmem:[%s4154_s0 + $0x28] sm:$0xff]  ;;  %v51_v18 = vld [vmem:[%s4154_s0 + $0x38] sm:$0xff] }
 0x209   :  { %v135_v19 = vpop.permute.xlu0 %134 }
 0x20a   :  { %vm143_vm9 = vcmp.eq.s32.totalorder %v135_v19, %v3323_v17 }
 0x20b   :  { %v2595_v23 = vsel %vm143_vm9, 1.0, %v3206_v22 }
 0x20c   :  { %v163_v25 = vpack.c.bf16 %v2595_v23, %v2594_v24 }
 0x20d   :  { %v567_v19 = vpop.permute.xlu0 %566 }
 0x20e   :  { %2602 = vmatmul.mubr.msk.bf16.gmra.mxu0 %vm192_vm4, %v162_v20 }
 0x20f   :  { %267 = vmatprep.mubr.bf16.mxu0 %v3205_v0 }
 0x211   :  { %v60_v24 = vpop.permute.xlu0 %59 }
 0x212   :  { %vm78_vm12 = vcmp.eq.s32.totalorder %v60_v24, %v3323_v17 }
 0x215   :  { %v66_v45 = vpop.permute.xlu0 %65 }
 0x216   :  { %2603 = vmatmul.mubr.msk.bf16.gmra.mxu0 %vm192_vm4, %v163_v25  ;;  %vm80_vm15 = vcmp.eq.s32.totalorder %v66_v45, %v3323_v17 }
 0x217   :  { %540 = vmatprep.mubr.bf16.mxu0 %v3205_v0 }
 0x26b   :  { %v463_v26 = vpop.permute.xlu1 %462 }
 0x26c   :  { %2623 = vmatmul.mubr.msk.bf16.vlgmr.msra.gmra.mxu0 %vm504_vm11, %v463_v26  ;;  %v2582_v26 = vsel %vm78_vm12, 1.0, %v3206_v22 }
 0x26d   :  { %671 = vmatpush1.bf16.msra.mxu0 %v3382_v62  ;;  %694 = vmatprep.mubr.bf16.mxu0 %v3205_v0 }
 0x26e   :  { %672 = vmatprep.subr.bf16.mxu0 %v3388_v63 }
 0x271   :  { %673 = vmatpush1.bf16.msra.mxu0 %v3394_v1 }
 0x272   :  { %674 = vmatprep.subr.bf16.mxu0 %v3401_v2 }
 0x275   :  { %675 = vmatpush1.bf16.msra.mxu0 %v3409_v3 }
 0x276   :  { %676 = vmatprep.subr.bf16.mxu0 %v3415_v4 }
 0x279   :  { %677 = vmatpush1.bf16.msra.mxu0 %v3423_v5 }
 0x27a   :  { %820 = vmatprep.subr.bf16.mxu0 %v3377_v61 }
 0x2c6   :  { %v3465_v31 = vpop.f32.mrf.mxu0 }
 0x2c8   :  { %v3467_v34 = vpop.f32.mrf.mxu0 }
 0x2ca   :  { %v3469_v35 = vpop.f32.mrf.mxu0 }
 0x2cc   :  { %v3471_v36 = vpop.f32.mrf.mxu0 }
 0x2ce   :  { %v3473_v38 = vpop.f32.mrf.mxu0 }
 0x2d0   :  { %v3475_v39 = vpop.f32.mrf.mxu0 }
 0x2d2   :  { %v3477_v40 = vpop.f32.mrf.mxu0 }
 0x2d4   :  { %v3479_v41 = vpop.f32.mrf.mxu0 }
 0x2d6   :  { %v3481_v42 = vpop.f32.mrf.mxu0 }
 0x2d8   :  { %v3483_v44 = vpop.f32.mrf.mxu0 }
 0x2da   :  { %v3485_v46 = vpop.f32.mrf.mxu0 }
 0x2dc   :  { %v3487_v49 = vpop.f32.mrf.mxu0 }
 0x32c   :  { %v542_v51 = vpop.f32.mrf.mxu0 }
 0x32d   :  { %v549_v52 = vadd.f32 %v542_v51, %v397_v50 }
 0x32e   :  { %v544_v54 = vpop.f32.mrf.mxu0 }
 0x32f   :  { %v2624_v55 = vmul.f32 -1.442695, %v549_v52  ;;  %v550_v56 = vadd.f32 %v544_v54, %v398_v53  ;;  %v2584_v52 = vsel %vm80_vm15, 1.0, %v3206_v22 }
 0x330   :  { %v546_v57 = vpop.f32.mrf.mxu0 }
 0x331   :  { %v2625_v58 = vmul.f32 -1.442695, %v550_v56  ;;  %3055 = vpow2.f32 %v2624_v55  ;;  %v72_v55 = vpop.permute.xlu0 %71 }
 0x332   :  { %v547_v59 = vpop.f32.mrf.mxu0  ;;  %vm82_vm1 = vcmp.eq.s32.totalorder %v72_v55, %v3323_v17 }
 0x333   :  { %3057 = vpow2.f32 %v2625_v58  ;;  %v2586_v57 = vsel %vm82_vm1, 1.0, %v3206_v22 }
 0x33e   :  { %v3056_v60 = vpop.eup %3055 }
 0x33f   :  { %v557_v9 = vadd.f32 1.0, %v3056_v60 }
 0x340   :  { %v3058_v6 = vpop.eup %3057 }
 0x341   :  { %v558_v8 = vadd.f32 1.0, %v3058_v6 }
 0x343   :  { %3059 = vrcp.f32 %v558_v8 }
 0x344   :  { %3061 = vrcp.f32 %v557_v9 }
 0x350   :  { %v3060_v10 = vpop.eup %3059 }
 0x351   :  { %v563_v11 = vmul.f32 2.0, %v3060_v10  ;;  %v3062_v13 = vpop.eup %3061 }
 0x352   :  { %v569_v20 = vmul.f32 %v3062_v13, %v567_v19 }
 0x353   :  { %v2626_v12 = vadd.f32 -1.0, %v563_v11 }
 0x355   :  { %v570_v14 = vmul.f32 %v3062_v13, %v2626_v12 }
 0x357   :  { %572 = vrot.lane.b32.xlu1 %v570_v14, %s3207_s4 }
 0x35b   :  { %62 = vperm.xlu1 %2952, %v47_v15  }
 0x35f   :  { %68 = vperm.xlu1 %2952, %v49_v16  }
 0x363   :  { %74 = vperm.xlu1 %2952, %v51_v18  }
 0x3c9   :  { %v573_v21 = vpop.permute.xlu1 %572 }
 0x3ca   :  { %v3501_v23 = vadd.f32 %v573_v21, %v569_v20 }
 0x3cc   :  { %3063 = vtanh.f32 %v3501_v23 }
 0x3d6   :  { %v63_v25 = vpop.permute.xlu1 %62 }
 0x3d7   :  { %vm79_vm13 = vcmp.eq.s32.totalorder %v63_v25, %v3323_v17 }
 0x3d8   :  { %v2583_v27 = vsel %vm79_vm13, 1.0, %v3206_v22 }
 0x3d9   :  { %v3064_v28 = vpop.eup %3063  ;;  %v101_v43 = vpack.c.bf16 %v2583_v27, %v2582_v26 }
 0x3da   :  { %v69_v47 = vpop.permute.xlu1 %68  ;;  %v3508_v48 = vmul.f32 %v3064_v28, %v3060_v10 }
 0x3db   :  { %vm81_vm14 = vcmp.eq.s32.totalorder %v69_v47, %v3323_v17  ;;  %2609 = vmatmul.mubr.msk.bf16.gmra.mxu1 %vm192_vm4, %v101_v43 }
 0x3dc   :  { %v580_v50 = vpack.c.bf16 %v3508_v48, %v3508_v48  ;;  %362 = vmatprep.mubr.bf16.mxu1 %v3205_v0  ;;  %v2585_v51 = vsel %vm81_vm14, 1.0, %v3206_v22 }
 0x3dd   :  { %v102_v54 = vpack.c.bf16 %v2585_v51, %v2584_v52 }
 0x3de   :  { %582 = vrot.lane.b32.xlu0 %v580_v50, %s3207_s4  ;;  %v75_v53 = vpop.permute.xlu1 %74 }
 0x3df   :  { %vm83_vm0 = vcmp.eq.s32.totalorder %v75_v53, %v3323_v17 }
 0x3e0   :  { %v2587_v56 = vsel %vm83_vm0, 1.0, %v3206_v22 }
 0x3e1   :  { %v103_v58 = vpack.c.bf16 %v2587_v56, %v2586_v57 }
 0x3e3   :  { %2610 = vmatmul.mubr.msk.bf16.gmra.mxu1 %vm192_vm4, %v102_v54 }
 0x3e4   :  { %372 = vmatprep.mubr.bf16.mxu1 %v3205_v0 }
 0x3eb   :  { %2611 = vmatmul.mubr.msk.bf16.gmra.mxu1 %vm192_vm4, %v103_v58 }
 0x3ec   :  { %619 = vmatprep.mubr.bf16.mxu1 %v3205_v0 }
 0x450   :  { %v583_v59 = vpop.permute.xlu0 %582 }
 0x451   :  { %2627 = vmatmul.mubr.msk.bf16.vlgmr.msra.gmra.mxu1 %vm504_vm11, %v583_v59 }
 0x452   :  { %746 = vmatpush1.bf16.msra.mxu1 %v3382_v62  ;;  %769 = vmatprep.mubr.bf16.mxu1 %v3205_v0 }
 0x453   :  { %747 = vmatprep.subr.bf16.mxu1 %v3388_v63 }
 0x456   :  { %748 = vmatpush1.bf16.msra.mxu1 %v3394_v1 }
 0x457   :  { %749 = vmatprep.subr.bf16.mxu1 %v3401_v2 }
 0x45a   :  { %750 = vmatpush1.bf16.msra.mxu1 %v3409_v3 }
 0x45b   :  { %751 = vmatprep.subr.bf16.mxu1 %v3415_v4 }
 0x45e   :  { %752 = vmatpush1.bf16.msra.mxu1 %v3423_v5 }
 0x45f   :  { %895 = vmatprep.subr.bf16.mxu1 %v3377_v61 }
 0x49b   :  { %v354_v17 = vpop.f32.mrf.mxu1 }
 0x49c   :  { %v355_v16 = vadd.f32 %v354_v17, %v3465_v31 }
 0x49d   :  { %v356_v60 = vpop.f32.mrf.mxu1 }
 0x49e   :  { %v357_v18 = vadd.f32 %v356_v60, %v3467_v34  ;;  %v399_v20 = vadd.f32 %v3346_v33, %v355_v16 }
 0x49f   :  { %v358_v6 = vpop.f32.mrf.mxu1 }
 0x4a0   :  { %v400_v25 = vadd.f32 %v3350_v37, %v357_v18 }
 0x4a1   :  { %v360_v8 = vpop.f32.mrf.mxu1 }
 0x4a3   :  { %v3537_v9 = vpop.f32.mrf.mxu1 }
 0x4a5   :  { %v3539_v10 = vpop.f32.mrf.mxu1 }
 0x4a7   :  { %v3541_v11 = vpop.f32.mrf.mxu1 }
 0x4a9   :  { %v3543_v12 = vpop.f32.mrf.mxu1 }
 0x4ab   :  { %v3545_v13 = vpop.f32.mrf.mxu1 }
 0x4ad   :  { %v3547_v14 = vpop.f32.mrf.mxu1 }
 0x4af   :  { %v3549_v15 = vpop.f32.mrf.mxu1 }
 0x4b1   :  { %v3553_v19 = vpop.f32.mrf.mxu1 }
 0x511   :  { %v621_v21 = vpop.f32.mrf.mxu1 }
 0x512   :  { %v628_v24 = vadd.f32 %v621_v21, %v399_v20  ;;  %v361_v20 = vadd.f32 %v360_v8, %v3471_v36 }
 0x513   :  { %v623_v26 = vpop.f32.mrf.mxu1 }
 0x514   :  { %v2628_v27 = vmul.f32 -1.442695, %v628_v24  ;;  %v629_v28 = vadd.f32 %v623_v26, %v400_v25  ;;  %v402_v26 = vadd.f32 %v3350_v37, %v361_v20 }
 0x515   :  { %v625_v43 = vpop.f32.mrf.mxu1 }
 0x516   :  { %v2629_v45 = vmul.f32 -1.442695, %v629_v28  ;;  %3065 = vpow2.f32 %v2628_v27 }
 0x517   :  { %v626_v47 = vpop.f32.mrf.mxu1 }
 0x518   :  { %3067 = vpow2.f32 %v2629_v45 }
 0x523   :  { %v3066_v50 = vpop.eup %3065 }
 0x524   :  { %v636_v34 = vadd.f32 1.0, %v3066_v50 }
 0x525   :  { %v3068_v31 = vpop.eup %3067 }
 0x526   :  { %v637_v51 = vadd.f32 1.0, %v3068_v31 }
 0x528   :  { %3069 = vrcp.f32 %v637_v51 }
 0x529   :  { %3071 = vrcp.f32 %v636_v34 }
 0x535   :  { %v3070_v52 = vpop.eup %3069 }
 0x536   :  { %v642_v53 = vmul.f32 2.0, %v3070_v52  ;;  %v3072_v55 = vpop.eup %3071 }
 0x537   :  { %v644_v57 = vmul.f32 %v3072_v55, %v3501_v23  ;;  %v359_v23 = vadd.f32 %v358_v6, %v3469_v35 }
 0x538   :  { %v2630_v54 = vadd.f32 -1.0, %v642_v53 }
 0x539   :  { %v401_v21 = vadd.f32 %v3346_v33, %v359_v23 }
 0x53a   :  { %v645_v56 = vmul.f32 %v3072_v55, %v2630_v54 }
 0x53c   :  { %647 = vrot.lane.b32.xlu1 %v645_v56, %s3207_s4 }
 0x5ae   :  { %v648_v58 = vpop.permute.xlu1 %647 }
 0x5af   :  { %v650_v59 = vadd.f32 %v648_v58, %v644_v57 }
 0x5b1   :  { %3073 = vtanh.f32 %v650_v59 }
 0x5be   :  { %v3074_v17 = vpop.eup %3073 }
 0x5bf   :  { %v3559_v60 = vmul.f32 %v3074_v17, %v3070_v52 }
 0x5c1   :  { %v655_v16 = vpack.c.bf16 %v3559_v60, %v3559_v60 }
 0x5c3   :  { %657 = vrot.lane.b32.xlu0 %v655_v16, %s3207_s4  ;;  %v367_v16 = vadd.f32 %v3539_v10, %v3475_v39 }
 0x635   :  { %v658_v18 = vpop.permute.xlu0 %657 }
 0x636   :  { %2631 = vmatmul.mubr.msk.bf16.vlgmr.msra.gmra.mxu0 %vm504_vm11, %v658_v18 }
 0x637   :  { %821 = vmatpush1.bf16.msra.mxu0 %v3382_v62  ;;  %844 = vmatprep.mubr.bf16.mxu0 %v3205_v0 }
 0x638   :  { %822 = vmatprep.subr.bf16.mxu0 %v3388_v63 }
 0x63b   :  { %823 = vmatpush1.bf16.msra.mxu0 %v3394_v1 }
 0x63c   :  { %824 = vmatprep.subr.bf16.mxu0 %v3401_v2 }
 0x63f   :  { %825 = vmatpush1.bf16.msra.mxu0 %v3409_v3 }
 0x640   :  { %826 = vmatprep.subr.bf16.mxu0 %v3415_v4 }
 0x643   :  { %827 = vmatpush1.bf16.msra.mxu0 %v3423_v5 }
 0x644   :  { %970 = vmatprep.subr.bf16.mxu0 %v3377_v61 }
 0x6f6   :  { %v696_v24 = vpop.f32.mrf.mxu0 }
 0x6f7   :  { %v703_v25 = vadd.f32 %v696_v24, %v401_v21  ;;  %v404_v21 = vadd.f32 %v3350_v37, %v367_v16 }
 0x6f8   :  { %v698_v27 = vpop.f32.mrf.mxu0 }
 0x6f9   :  { %v2632_v28 = vmul.f32 -1.442695, %v703_v25  ;;  %v704_v43 = vadd.f32 %v698_v27, %v402_v26 }
 0x6fa   :  { %v700_v45 = vpop.f32.mrf.mxu0 }
 0x6fb   :  { %v2633_v47 = vmul.f32 -1.442695, %v704_v43  ;;  %3075 = vpow2.f32 %v2632_v28 }
 0x6fc   :  { %v701_v50 = vpop.f32.mrf.mxu0 }
 0x6fd   :  { %3077 = vpow2.f32 %v2633_v47 }
 0x708   :  { %v3076_v31 = vpop.eup %3075 }
 0x709   :  { %v711_v35 = vadd.f32 1.0, %v3076_v31 }
 0x70a   :  { %v3078_v61 = vpop.eup %3077 }
 0x70b   :  { %v712_v51 = vadd.f32 1.0, %v3078_v61 }
 0x70d   :  { %3079 = vrcp.f32 %v712_v51 }
 0x70e   :  { %3081 = vrcp.f32 %v711_v35 }
 0x71a   :  { %v3080_v36 = vpop.eup %3079 }
 0x71b   :  { %v717_v6 = vmul.f32 2.0, %v3080_v36  ;;  %v3082_v34 = vpop.eup %3081 }
 0x71c   :  { %v719_v53 = vmul.f32 %v3082_v34, %v650_v59  ;;  %v365_v59 = vadd.f32 %v3537_v9, %v3473_v38 }
 0x71d   :  { %v2634_v8 = vadd.f32 -1.0, %v717_v6 }
 0x71e   :  { %v403_v18 = vadd.f32 %v3346_v33, %v365_v59 }
 0x71f   :  { %v720_v52 = vmul.f32 %v3082_v34, %v2634_v8 }
 0x721   :  { %722 = vrot.lane.b32.xlu1 %v720_v52, %s3207_s4 }
 0x793   :  { %v723_v54 = vpop.permute.xlu1 %722 }
 0x794   :  { %v725_v55 = vadd.f32 %v723_v54, %v719_v53  ;;  %v369_v53 = vadd.f32 %v3541_v11, %v3477_v40 }
 0x796   :  { %3083 = vtanh.f32 %v725_v55  ;;  %v405_v54 = vadd.f32 %v3346_v33, %v369_v53 }
 0x7a3   :  { %v3084_v56 = vpop.eup %3083 }
 0x7a4   :  { %v3579_v57 = vmul.f32 %v3084_v56, %v3080_v36 }
 0x7a6   :  { %v730_v58 = vpack.c.bf16 %v3579_v57, %v3579_v57 }
 0x7a8   :  { %732 = vrot.lane.b32.xlu0 %v730_v58, %s3207_s4 }
 0x81a   :  { %v733_v17 = vpop.permute.xlu0 %732 }
 0x81b   :  { %2635 = vmatmul.mubr.msk.bf16.vlgmr.msra.gmra.mxu1 %vm504_vm11, %v733_v17 }
 0x81c   :  { %896 = vmatpush1.bf16.msra.mxu1 %v3382_v62  ;;  %919 = vmatprep.mubr.bf16.mxu1 %v3205_v0 }
 0x81d   :  { %897 = vmatprep.subr.bf16.mxu1 %v3388_v63 }
 0x820   :  { %898 = vmatpush1.bf16.msra.mxu1 %v3394_v1 }
 0x821   :  { %899 = vmatprep.subr.bf16.mxu1 %v3401_v2 }
 0x824   :  { %900 = vmatpush1.bf16.msra.mxu1 %v3409_v3 }
 0x825   :  { %901 = vmatprep.subr.bf16.mxu1 %v3415_v4 }
 0x828   :  { %902 = vmatpush1.bf16.msra.mxu1 %v3423_v5 }
 0x8db   :  { %v771_v23 = vpop.f32.mrf.mxu1 }
 0x8dc   :  { %v778_v20 = vadd.f32 %v771_v23, %v403_v18 }
 0x8dd   :  { %v773_v24 = vpop.f32.mrf.mxu1 }
 0x8de   :  { %v2636_v25 = vmul.f32 -1.442695, %v778_v20  ;;  %v779_v26 = vadd.f32 %v773_v24, %v404_v21 }
 0x8df   :  { %v775_v27 = vpop.f32.mrf.mxu1 }
 0x8e0   :  { %v2637_v28 = vmul.f32 -1.442695, %v779_v26  ;;  %3085 = vpow2.f32 %v2636_v25 }
 0x8e1   :  { %v776_v43 = vpop.f32.mrf.mxu1 }
 0x8e2   :  { %3087 = vpow2.f32 %v2637_v28  ;;  %v375_v43 = vadd.f32 %v3545_v13, %v3481_v42 }
 0x8ed   :  { %v3086_v45 = vpop.eup %3085 }
 0x8ee   :  { %v786_v9 = vadd.f32 1.0, %v3086_v45  ;;  %v377_v45 = vadd.f32 %v3547_v14, %v3483_v44 }
 0x8ef   :  { %v3088_v47 = vpop.eup %3087 }
 0x8f0   :  { %v787_v38 = vadd.f32 1.0, %v3088_v47  ;;  %v407_v47 = vadd.f32 %v3346_v33, %v375_v43 }
 0x8f2   :  { %3089 = vrcp.f32 %v787_v38 }
 0x8f3   :  { %3091 = vrcp.f32 %v786_v9 }
 0x8ff   :  { %v3090_v39 = vpop.eup %3089 }
 0x900   :  { %v792_v10 = vmul.f32 2.0, %v3090_v39  ;;  %v3092_v31 = vpop.eup %3091 }
 0x901   :  { %v794_v51 = vmul.f32 %v3092_v31, %v725_v55 }
 0x902   :  { %v2638_v50 = vadd.f32 -1.0, %v792_v10 }
 0x904   :  { %v795_v61 = vmul.f32 %v3092_v31, %v2638_v50 }
 0x906   :  { %797 = vrot.lane.b32.xlu1 %v795_v61, %s3207_s4 }
 0x978   :  { %v798_v35 = vpop.permute.xlu1 %797 }
 0x979   :  { %v800_v36 = vadd.f32 %v798_v35, %v794_v51 }
 0x97b   :  { %3093 = vtanh.f32 %v800_v36 }
 0x988   :  { %v3094_v6 = vpop.eup %3093 }
 0x989   :  { %v3600_v8 = vmul.f32 %v3094_v6, %v3090_v39  ;;  %v408_v39 = vadd.f32 %v3350_v37, %v377_v45 }
 0x98b   :  { %v805_v34 = vpack.c.bf16 %v3600_v8, %v3600_v8 }
 0x98d   :  { %807 = vrot.lane.b32.xlu0 %v805_v34, %s3207_s4 }
 0x9ff   :  { %v808_v52 = vpop.permute.xlu0 %807 }
 0xa00   :  { %2639 = vmatmul.mubr.msk.bf16.vlgmr.msra.gmra.mxu0 %vm504_vm11, %v808_v52 }
 0xa01   :  { %971 = vmatpush1.bf16.msra.mxu0 %v3382_v62  ;;  %994 = vmatprep.mubr.bf16.mxu0 %v3205_v0  ;;  %v371_v62 = vadd.f32 %v3543_v12, %v3479_v41 }
 0xa02   :  { %972 = vmatprep.subr.bf16.mxu0 %v3388_v63 }
 0xa05   :  { %973 = vmatpush1.bf16.msra.mxu0 %v3394_v1  ;;  %v406_v1 = vadd.f32 %v3350_v37, %v371_v62 }
 0xa06   :  { %974 = vmatprep.subr.bf16.mxu0 %v3401_v2 }
 0xa09   :  { %975 = vmatpush1.bf16.msra.mxu0 %v3409_v3 }
 0xa0a   :  { %976 = vmatprep.subr.bf16.mxu0 %v3415_v4 }
 0xa0d   :  { %977 = vmatpush1.bf16.msra.mxu0 %v3423_v5 }
 0xac0   :  { %v846_v55 = vpop.f32.mrf.mxu0 }
 0xac1   :  { %v853_v63 = vadd.f32 %v846_v55, %v405_v54 }
 0xac2   :  { %v848_v56 = vpop.f32.mrf.mxu0 }
 0xac3   :  { %v2640_v2 = vmul.f32 -1.442695, %v853_v63  ;;  %v854_v58 = vadd.f32 %v848_v56, %v406_v1 }
 0xac4   :  { %v850_v3 = vpop.f32.mrf.mxu0 }
 0xac5   :  { %v2641_v17 = vmul.f32 -1.442695, %v854_v58  ;;  %3095 = vpow2.f32 %v2640_v2  ;;  %v2977_v58 = vld [vmem:[%s4159_s6 + $0x30] ss:$8 sps:$4 sm:$0xff]   ;;  %v2979_v3 = vld [vmem:[%s4159_s6 + $0x34] ss:$8 sps:$4 sm:$0xff]  }
 0xac6   :  { %v851_v4 = vpop.f32.mrf.mxu0  ;;  %1261 = vmatprep.subr.bf16.mxu0 %v2979_v3 }
 0xac7   :  { %3097 = vpow2.f32 %v2641_v17  ;;  %v2982_v17 = vld [vmem:[%s4159_s6 + $0x24] ss:$8 sps:$4 sm:$0xff]   ;;  %v2980_v4 = vld [vmem:[%s4159_s6 + $0x20] ss:$8 sps:$4 sm:$0xff]  }
 0xad2   :  { %v3096_v5 = vpop.eup %3095 }
 0xad3   :  { %v861_v11 = vadd.f32 1.0, %v3096_v5  ;;  %v2985_v5 = vld [vmem:[%s4159_s6 + $0x14] ss:$8 sps:$4 sm:$0xff]  }
 0xad4   :  { %v3098_v59 = vpop.eup %3097 }
 0xad5   :  { %v862_v40 = vadd.f32 1.0, %v3098_v59  ;;  %v2983_v59 = vld [vmem:[%s4159_s6 + $0x10] ss:$8 sps:$4 sm:$0xff]  }
 0xad7   :  { %3099 = vrcp.f32 %v862_v40  ;;  %v379_v40 = vadd.f32 %v3549_v15, %v3485_v46 }
 0xad8   :  { %3101 = vrcp.f32 %v861_v11  ;;  %v381_v11 = vadd.f32 %v3553_v19, %v3487_v49 }
 0xae4   :  { %v3100_v41 = vpop.eup %3099 }
 0xae5   :  { %v867_v12 = vmul.f32 2.0, %v3100_v41  ;;  %v3102_v18 = vpop.eup %3101 }
 0xae6   :  { %v869_v20 = vmul.f32 %v3102_v18, %v800_v36 }
 0xae7   :  { %v2642_v16 = vadd.f32 -1.0, %v867_v12 }
 0xae9   :  { %v870_v23 = vmul.f32 %v3102_v18, %v2642_v16  ;;  %v410_v18 = vadd.f32 %v3350_v37, %v381_v11  ;;  %v2986_v37 = vld [vmem:[%s4159_s6] ss:$8 sps:$4 sm:$0xff]  }
 0xaeb   :  { %872 = vrot.lane.b32.xlu1 %v870_v23, %s3207_s4 }
 0xb5d   :  { %v873_v21 = vpop.permute.xlu1 %872 }
 0xb5e   :  { %v875_v24 = vadd.f32 %v873_v21, %v869_v20 }
 0xb60   :  { %3103 = vtanh.f32 %v875_v24 }
 0xb6d   :  { %v3104_v25 = vpop.eup %3103 }
 0xb6e   :  { %v3621_v26 = vmul.f32 %v3104_v25, %v3100_v41  ;;  %v409_v41 = vadd.f32 %v3346_v33, %v379_v40  ;;  %v2988_v33 = vld [vmem:[%s4159_s6 + $0x4] ss:$8 sps:$4 sm:$0xff]  }
 0xb70   :  { %v880_v27 = vpack.c.bf16 %v3621_v26, %v3621_v26 }
 0xb72   :  { %882 = vrot.lane.b32.xlu0 %v880_v27, %s3207_s4 }
 0xbe4   :  { %v883_v28 = vpop.permute.xlu0 %882 }
 0xbe5   :  { %2643 = vmatmul.mubr.msk.bf16.vlgmr.msra.gmra.mxu1 %vm504_vm11, %v883_v28 }
 0xbe6   :  { %1148 = vmatprep.mubr.bf16.mxu1 %v3205_v0 }
 0xca5   :  { %v921_v38 = vpop.f32.mrf.mxu1 }
 0xca6   :  { %v928_v9 = vadd.f32 %v921_v38, %v407_v47 }
 0xca7   :  { %v923_v10 = vpop.f32.mrf.mxu1 }
 0xca8   :  { %v2644_v50 = vmul.f32 -1.442695, %v928_v9  ;;  %v929_v31 = vadd.f32 %v923_v10, %v408_v39  ;;  %v1028_v9 = vpack.c.bf16 %v3508_v48, %v3432_v7  ;;  %v1033_v39 = vpack.c.bf16 %v3600_v8, %v3621_v26  ;;  %v2989_v10 = vld [vmem:[%s4160_s7 + $0x30] ss:$8 sps:$4 sm:$0xff]  }
 0xca9   :  { %v925_v61 = vpop.f32.mrf.mxu1 }
 0xcaa   :  { %v2645_v51 = vmul.f32 -1.442695, %v929_v31  ;;  %3105 = vpow2.f32 %v2644_v50  ;;  %v2991_v50 = vld [vmem:[%s4160_s7 + $0x34] ss:$8 sps:$4 sm:$0xff]   ;;  %v1035_v31 = vpack.c.bf16 %v3432_v7, %v3508_v48  ;;  %v2994_v61 = vld [vmem:[%s4160_s7 + $0x24] ss:$8 sps:$4 sm:$0xff]  }
 0xcab   :  { %v926_v35 = vpop.f32.mrf.mxu1  ;;  %1124 = vmatprep.subr.bf16.mxu1 %v2991_v50  ;;  %v2995_v7 = vld [vmem:[%s4160_s7 + $0x10] ss:$8 sps:$4 sm:$0xff]   ;;  %v3000_v48 = vld [vmem:[%s4160_s7 + $0x4] ss:$8 sps:$4 sm:$0xff]  }
 0xcac   :  { %3107 = vpow2.f32 %v2645_v51  ;;  %1125 = vmatpush1.bf16.msra.mxu1 %v2989_v10  ;;  %v2992_v51 = vld [vmem:[%s4160_s7 + $0x20] ss:$8 sps:$4 sm:$0xff]   ;;  %v2997_v35 = vld [vmem:[%s4160_s7 + $0x14] ss:$8 sps:$4 sm:$0xff]  }
 0xcad   :  { %1126 = vmatprep.subr.bf16.mxu1 %v2994_v61 }
 0xcb0   :  { %1127 = vmatpush1.bf16.msra.mxu1 %v2992_v51 }
 0xcb1   :  { %1128 = vmatprep.subr.bf16.mxu1 %v2997_v35 }
 0xcb4   :  { %1129 = vmatpush1.bf16.msra.mxu1 %v2995_v7 }
 0xcb5   :  { %1130 = vmatprep.subr.bf16.mxu1 %v3000_v48 }
 0xcb7   :  { %v3106_v36 = vpop.eup %3105 }
 0xcb8   :  { %v936_v13 = vadd.f32 1.0, %v3106_v36  ;;  %v2998_v36 = vld [vmem:[%s4160_s7] ss:$8 sps:$4 sm:$0xff]  }
 0xcb9   :  { %v3108_v6 = vpop.eup %3107  ;;  %1131 = vmatpush1.bf16.msra.mxu1 %v2998_v36 }
 0xcba   :  { %v937_v42 = vadd.f32 1.0, %v3108_v6 }
 0xcbc   :  { %3109 = vrcp.f32 %v937_v42 }
 0xcbd   :  { %3111 = vrcp.f32 %v936_v13 }
 0xcc9   :  { %v3110_v44 = vpop.eup %3109 }
 0xcca   :  { %v942_v14 = vmul.f32 2.0, %v3110_v44  ;;  %v3112_v52 = vpop.eup %3111 }
 0xccb   :  { %v944_v62 = vmul.f32 %v3112_v52, %v875_v24 }
 0xccc   :  { %v2646_v34 = vadd.f32 -1.0, %v942_v14 }
 0xcce   :  { %v945_v53 = vmul.f32 %v3112_v52, %v2646_v34 }
 0xcd0   :  { %947 = vrot.lane.b32.xlu1 %v945_v53, %s3207_s4 }
 0xd42   :  { %v948_v54 = vpop.permute.xlu1 %947 }
 0xd43   :  { %v3635_v55 = vadd.f32 %v948_v54, %v944_v62  ;;  %v1326_v54 = vld [vmem:[%s4161_s8] sm:$0x3] }
 0xd45   :  { %3113 = vtanh.f32 %v3635_v55 }
 0xd52   :  { %v3114_v63 = vpop.eup %3113 }
 0xd53   :  { %v3638_v1 = vmul.f32 %v3114_v63, %v3110_v44  ;;  %v3723_v63 = vrot.slane %v1326_v54, %v387_v30 }
 0xd55   :  { %v955_v56 = vpack.c.bf16 %v3638_v1, %v3638_v1 }
 0xd57   :  { %957 = vrot.lane.b32.xlu0 %v955_v56, %s3207_s4 }
 0xdc9   :  { %v958_v2 = vpop.permute.xlu0 %957 }
 0xdca   :  { %2647 = vmatmul.mubr.msk.bf16.vlgmr.msra.gmra.mxu0 %vm504_vm11, %v958_v2 }
 0xdcb   :  { %1285 = vmatprep.mubr.bf16.mxu0 %v3205_v0  ;;  %1262 = vmatpush1.bf16.msra.mxu0 %v2977_v58  ;;  %v3727_v58 = vrot.slane %v1326_v54, %v391_v32 }
 0xdcc   :  { %1263 = vmatprep.subr.bf16.mxu0 %v2982_v17 }
 0xdcf   :  { %1264 = vmatpush1.bf16.msra.mxu0 %v2980_v4 }
 0xdd0   :  { %1265 = vmatprep.subr.bf16.mxu0 %v2985_v5 }
 0xdd3   :  { %1266 = vmatpush1.bf16.msra.mxu0 %v2983_v59 }
 0xdd4   :  { %1267 = vmatprep.subr.bf16.mxu0 %v2988_v33  ;;  %v3790_v33 = vld [vmem:[%s4162_s9] ss:$8 sps:$4 sm:$0xff]  }
 0xdd7   :  { %1268 = vmatpush1.bf16.msra.mxu0 %v2986_v37 }
 0xe8a   :  { %v996_v12 = vpop.f32.mrf.mxu0 }
 0xe8b   :  { %v1003_v16 = vadd.f32 %v996_v12, %v409_v41 }
 0xe8c   :  { %v998_v23 = vpop.f32.mrf.mxu0 }
 0xe8d   :  { %v2648_v20 = vmul.f32 -1.442695, %v1003_v16  ;;  %v1004_v21 = vadd.f32 %v998_v23, %v410_v18 }
 0xe8e   :  { %v1000_v24 = vpop.f32.mrf.mxu0 }
 0xe8f   :  { %v2649_v25 = vmul.f32 -1.442695, %v1004_v21  ;;  %3115 = vpow2.f32 %v2648_v20  ;;  %v1029_v21 = vpack.c.bf16 %v3579_v57, %v3559_v60 }
 0xe90   :  { %v1001_v27 = vpop.f32.mrf.mxu0 }
 0xe91   :  { %3117 = vpow2.f32 %v2649_v25  ;;  %v3741_v27 = vld [vmem:[%s4162_s9 + $0x34] ss:$8 sps:$4 sm:$0xff]  }
 0xe92   :  { %1458 = vmatprep.subr.bf16.mxu1 %v3741_v27  ;;  %1537 = vmatprep.subr.bf16.mxu0 %v3741_v27 }
 0xe9c   :  { %v3116_v28 = vpop.eup %3115 }
 0xe9d   :  { %v1011_v15 = vadd.f32 1.0, %v3116_v28  ;;  %v3746_v28 = vld [vmem:[%s4162_s9 + $0x30] ss:$8 sps:$4 sm:$0xff]  }
 0xe9e   :  { %v3118_v43 = vpop.eup %3117 }
 0xe9f   :  { %v1012_v46 = vadd.f32 1.0, %v3118_v43  ;;  %v1034_v43 = vpack.c.bf16 %v3559_v60, %v3579_v57  ;;  %v3769_v60 = vld [vmem:[%s4162_s9 + $0x14] ss:$8 sps:$4 sm:$0xff]   ;;  %v3776_v57 = vld [vmem:[%s4162_s9 + $0x10] ss:$8 sps:$4 sm:$0xff]  }
 0xea1   :  { %3119 = vrcp.f32 %v1012_v46  ;;  %v3761_v46 = vld [vmem:[%s4162_s9 + $0x20] ss:$8 sps:$4 sm:$0xff]  }
 0xea2   :  { %3121 = vrcp.f32 %v1011_v15  ;;  %v3783_v15 = vld [vmem:[%s4162_s9 + $0x4] ss:$8 sps:$4 sm:$0xff]  }
 0xeae   :  { %v3120_v49 = vpop.eup %3119 }
 0xeaf   :  { %v1017_v19 = vmul.f32 2.0, %v3120_v49  ;;  %v3122_v47 = vpop.eup %3121 }
 0xeb0   :  { %v1019_v6 = vmul.f32 %v3122_v47, %v3635_v55 }
 0xeb1   :  { %v2650_v45 = vadd.f32 -1.0, %v1017_v19 }
 0xeb3   :  { %v1020_v38 = vmul.f32 %v3122_v47, %v2650_v45 }
 0xeb5   :  { %1022 = vrot.lane.b32.xlu1 %v1020_v38, %s3207_s4 }
 0xeb9   :  { %1193 = vrot.lane.b32.xlu1 %v1028_v9, %s3207_s4 }
 0xebd   :  { %1058 = vrot.lane.b32.xlu1 %v1033_v39, %s3207_s4 }
 0xec1   :  { %1062 = vrot.lane.b32.xlu1 %v1035_v31, %s3207_s4 }
 0xf27   :  { %v1023_v42 = vpop.permute.xlu1 %1022 }
 0xf28   :  { %v1025_v13 = vadd.f32 %v1023_v42, %v1019_v6 }
 0xf2a   :  { %3123 = vtanh.f32 %v1025_v13 }
 0xf2b   :  { %v1194_v44 = vpop.permute.xlu1 %1193 }
 0xf2c   :  { %2671 = vmatmul.mubr.msk.bf16.vlgmr.msra.gmra.mxu0 %vm504_vm11, %v1194_v44 }
 0xf2d   :  { %1295 = vmatprep.mubr.bf16.mxu0 %v3205_v0  ;;  %1538 = vmatpush1.bf16.msra.mxu0 %v3746_v28 }
 0xf2f   :  { %v1059_v62 = vpop.permute.xlu1 %1058 }
 0xf33   :  { %v1063_v37 = vpop.permute.xlu1 %1062 }
 0xf37   :  { %v3124_v14 = vpop.eup %3123 }
 0xf38   :  { %v1027_v34 = vmul.f32 %v3124_v14, %v3120_v49 }
 0xf3a   :  { %v1032_v52 = vpack.c.bf16 %v3638_v1, %v1027_v34  ;;  %v1031_v24 = vpack.c.bf16 %v1027_v34, %v3638_v1  ;;  %v3754_v1 = vld [vmem:[%s4162_s9 + $0x24] ss:$8 sps:$4 sm:$0xff]  }
 0xf3b   :  { %1539 = vmatprep.subr.bf16.mxu0 %v3754_v1 }
 0xf3c   :  { %1056 = vrot.lane.b32.xlu0 %v1032_v52, %s3207_s4  ;;  %1540 = vmatpush1.bf16.msra.mxu0 %v3761_v46 }
 0xf3d   :  { %1541 = vmatprep.subr.bf16.mxu0 %v3769_v60 }
 0xf40   :  { %1542 = vmatpush1.bf16.msra.mxu0 %v3776_v57 }
 0xf41   :  { %1543 = vmatprep.subr.bf16.mxu0 %v3783_v15 }
 0xf44   :  { %1544 = vmatpush1.bf16.msra.mxu0 %v3790_v33 }
 0xf45   :  { %1687 = vmatprep.subr.bf16.mxu0 %v3741_v27 }
 0xfae   :  { %v1057_v53 = vpop.permute.xlu0 %1056 }
 0xfaf   :  { %2659 = vmatmul.mubr.msk.bf16.vlgmr.msra.gmra.mxu1 %vm504_vm11, %v1057_v53 }
 0xfb0   :  { %1158 = vmatprep.mubr.bf16.mxu1 %v3205_v0  ;;  %1459 = vmatpush1.bf16.msra.mxu1 %v3746_v28 }
 0xfb1   :  { %1460 = vmatprep.subr.bf16.mxu1 %v3754_v1 }
 0xfb4   :  { %1461 = vmatpush1.bf16.msra.mxu1 %v3761_v46 }
 0xfb5   :  { %1462 = vmatprep.subr.bf16.mxu1 %v3769_v60 }
 0xfb7   :  { %2660 = vmatmul.mubr.msk.bf16.gmra.mxu1 %vm504_vm11, %v1059_v62 }
 0xfb8   :  { %1168 = vmatprep.mubr.bf16.mxu1 %v3205_v0  ;;  %1463 = vmatpush1.bf16.msra.mxu1 %v3776_v57 }
 0xfb9   :  { %1464 = vmatprep.subr.bf16.mxu1 %v3783_v15 }
 0xfbc   :  { %1465 = vmatpush1.bf16.msra.mxu1 %v3790_v33 }
 0xfbd   :  { %1612 = vmatprep.subr.bf16.mxu1 %v3741_v27 }
 0xfec   :  { %v1287_v55 = vpop.f32.mrf.mxu0 }
 0xfee   :  { %v1289_v3 = vpop.f32.mrf.mxu0 }
 0xff0   :  { %v1291_v44 = vpop.f32.mrf.mxu0 }
 0xff2   :  { %v1293_v52 = vpop.f32.mrf.mxu0 }
0x106f   :  { %v1150_v56 = vpop.f32.mrf.mxu1 }
0x1070   :  { %v1288_v2 = vadd.f32 %v1287_v55, %v1150_v56 }
0x1071   :  { %v1152_v17 = vpop.f32.mrf.mxu1 }
0x1072   :  { %v1338_v4 = vadd.f32 %v3723_v63, %v1288_v2  ;;  %v1290_v5 = vadd.f32 %v1289_v3, %v1152_v17 }
0x1073   :  { %v1154_v10 = vpop.f32.mrf.mxu1 }
0x1074   :  { %v2675_v59 = vmul.f32 -1.442695, %v1338_v4  ;;  %v1339_v40 = vadd.f32 %v3727_v58, %v1290_v5  ;;  %v1292_v34 = vadd.f32 %v1291_v44, %v1154_v10 }
0x1075   :  { %v1156_v50 = vpop.f32.mrf.mxu1 }
0x1076   :  { %v2676_v11 = vmul.f32 -1.442695, %v1339_v40  ;;  %3125 = vpow2.f32 %v2675_v59  ;;  %v1294_v53 = vadd.f32 %v1293_v52, %v1156_v50  ;;  %v1340_v54 = vadd.f32 %v3723_v63, %v1292_v34 }
0x1077   :  { %v3821_v31 = vpop.f32.mrf.mxu1 }
0x1078   :  { %3127 = vpow2.f32 %v2676_v11  ;;  %v1341_v2 = vadd.f32 %v3727_v58, %v1294_v53 }
0x1079   :  { %v3823_v61 = vpop.f32.mrf.mxu1 }
0x107b   :  { %v3825_v51 = vpop.f32.mrf.mxu1 }
0x107d   :  { %v3827_v35 = vpop.f32.mrf.mxu1 }
0x1083   :  { %v3126_v41 = vpop.eup %3125 }
0x1084   :  { %v1386_v16 = vadd.f32 1.0, %v3126_v41 }
0x1085   :  { %v3128_v30 = vpop.eup %3127 }
0x1086   :  { %v1387_v12 = vadd.f32 1.0, %v3128_v30 }
0x1088   :  { %3129 = vrcp.f32 %v1387_v12 }
0x1089   :  { %3131 = vrcp.f32 %v1386_v16 }
0x1095   :  { %v3130_v29 = vpop.eup %3129 }
0x1096   :  { %v1392_v32 = vmul.f32 2.0, %v3130_v29  ;;  %v3132_v23 = vpop.eup %3131 }
0x1098   :  { %v2677_v18 = vadd.f32 -1.0, %v1392_v32 }
0x109a   :  { %v1394_v20 = vmul.f32 %v3132_v23, %v2677_v18 }
0x109c   :  { %1508 = vrot.lane.b32.xlu1 %v1394_v20, %s3207_s4  ;;  %3133 = vtanh.f32 %v1394_v20  ;;  %v1030_v20 = vpack.c.bf16 %v3621_v26, %v3600_v8 }
0x10a0   :  { %1195 = vrot.lane.b32.xlu1 %v1029_v21, %s3207_s4 }
0x10a4   :  { %1199 = vrot.lane.b32.xlu1 %v1031_v24, %s3207_s4 }
0x10a9   :  { %v3134_v25 = vpop.eup %3133 }
0x10aa   :  { %1397 = vrot.lane.b32.xlu0 %v3134_v25, %s3207_s4 }
0x10ae   :  { %1060 = vrot.lane.b32.xlu0 %v1034_v43, %s3207_s4 }
0x110e   :  { %v3799_v49 = vpop.permute.xlu1 %1508 }
0x1112   :  { %v1196_v19 = vpop.permute.xlu1 %1195 }
0x1113   :  { %2672 = vmatmul.mubr.msk.bf16.gmra.mxu0 %vm504_vm11, %v1196_v19 }
0x1114   :  { %1305 = vmatprep.mubr.bf16.mxu0 %v3205_v0 }
0x111c   :  { %v1398_v45 = vpop.permute.xlu0 %1397 }
0x111d   :  { %v1400_v47 = vmul.f32 %v3130_v29, %v1398_v45 }
0x111f   :  { %v1403_v38 = vpack.c.bf16 %v1400_v47, %v1400_v47 }
0x1120   :  { %v1061_v9 = vpop.permute.xlu0 %1060 }
0x1121   :  { %1405 = vrot.lane.b32.xlu0 %v1403_v38, %s3207_s4  ;;  %2661 = vmatmul.mubr.msk.bf16.gmra.mxu1 %vm504_vm11, %v1061_v9 }
0x1122   :  { %1178 = vmatprep.mubr.bf16.mxu1 %v3205_v0 }
0x1129   :  { %2662 = vmatmul.mubr.msk.bf16.gmra.mxu1 %vm504_vm11, %v1063_v37  ;;  %v1200_v37 = vpop.permute.xlu1 %1199 }
0x112a   :  { %1482 = vmatprep.mubr.bf16.mxu1 %v3205_v0 }
0x1193   :  { %v3808_v39 = vpop.permute.xlu0 %1405 }
0x1194   :  { %2686 = vmatmul.mubr.msk.bf16.vlgmr.msra.gmra.mxu1 %vm504_vm11, %v3808_v39 }
0x1195   :  { %1613 = vmatpush1.bf16.msra.mxu1 %v3746_v28  ;;  %1636 = vmatprep.mubr.bf16.mxu1 %v3205_v0 }
0x1196   :  { %1614 = vmatprep.subr.bf16.mxu1 %v3754_v1 }
0x1199   :  { %1615 = vmatpush1.bf16.msra.mxu1 %v3761_v46 }
0x119a   :  { %1616 = vmatprep.subr.bf16.mxu1 %v3769_v60 }
0x119d   :  { %1617 = vmatpush1.bf16.msra.mxu1 %v3776_v57 }
0x119e   :  { %1618 = vmatprep.subr.bf16.mxu1 %v3783_v15 }
0x11a1   :  { %1619 = vmatpush1.bf16.msra.mxu1 %v3790_v33 }
0x11a2   :  { %1762 = vmatprep.subr.bf16.mxu1 %v3741_v27 }
0x11e1   :  { %v3829_v7 = vpop.f32.mrf.mxu1 }
0x11e3   :  { %v3831_v48 = vpop.f32.mrf.mxu1 }
0x11e5   :  { %v3833_v36 = vpop.f32.mrf.mxu1 }
0x11e7   :  { %v3835_v6 = vpop.f32.mrf.mxu1 }
0x11e9   :  { %v3837_v42 = vpop.f32.mrf.mxu1 }
0x11eb   :  { %v3839_v13 = vpop.f32.mrf.mxu1 }
0x11ed   :  { %v3841_v14 = vpop.f32.mrf.mxu1 }
0x11ef   :  { %v3843_v62 = vpop.f32.mrf.mxu1 }
0x1254   :  { %v1484_v55 = vpop.f32.mrf.mxu1 }
0x1255   :  { %v1491_v56 = vadd.f32 %v1484_v55, %v1340_v54 }
0x1256   :  { %v1486_v3 = vpop.f32.mrf.mxu1 }
0x1257   :  { %v2687_v17 = vmul.f32 -1.442695, %v1491_v56  ;;  %v1492_v4 = vadd.f32 %v1486_v3, %v1341_v2 }
0x1258   :  { %v1488_v5 = vpop.f32.mrf.mxu1 }
0x1259   :  { %v2688_v59 = vmul.f32 -1.442695, %v1492_v4  ;;  %3135 = vpow2.f32 %v2687_v17 }
0x125a   :  { %v1489_v40 = vpop.f32.mrf.mxu1 }
0x125b   :  { %3137 = vpow2.f32 %v2688_v59 }
0x1266   :  { %v3136_v11 = vpop.eup %3135 }
0x1267   :  { %v1499_v12 = vadd.f32 1.0, %v3136_v11 }
0x1268   :  { %v3138_v41 = vpop.eup %3137 }
0x1269   :  { %v1500_v30 = vadd.f32 1.0, %v3138_v41 }
0x126b   :  { %3139 = vrcp.f32 %v1500_v30 }
0x126c   :  { %3141 = vrcp.f32 %v1499_v12 }
0x1278   :  { %v3140_v16 = vpop.eup %3139 }
0x1279   :  { %v1505_v29 = vmul.f32 2.0, %v3140_v16  ;;  %v3142_v18 = vpop.eup %3141 }
0x127a   :  { %v1511_v21 = vmul.f32 %v3142_v18, %v3799_v49  ;;  %v1297_v49 = vpop.f32.mrf.mxu0 }
0x127b   :  { %v2689_v32 = vadd.f32 -1.0, %v1505_v29  ;;  %v1298_v55 = vadd.f32 %v1297_v49, %v3821_v31 }
0x127c   :  { %v1299_v47 = vpop.f32.mrf.mxu0 }
0x127d   :  { %v1512_v23 = vmul.f32 %v3142_v18, %v2689_v32  ;;  %v1300_v56 = vadd.f32 %v1299_v47, %v3823_v61  ;;  %v1342_v3 = vadd.f32 %v3723_v63, %v1298_v55 }
0x127e   :  { %v1301_v38 = vpop.f32.mrf.mxu0 }
0x127f   :  { %1514 = vrot.lane.b32.xlu0 %v1512_v23, %s3207_s4  ;;  %v1343_v5 = vadd.f32 %v3727_v58, %v1300_v56 }
0x1280   :  { %v1303_v9 = vpop.f32.mrf.mxu0 }
0x1281   :  { %v1304_v47 = vadd.f32 %v1303_v9, %v3827_v35 }
0x1283   :  { %1197 = vrot.lane.b32.xlu0 %v1030_v20, %s3207_s4 }
0x12f1   :  { %v1515_v24 = vpop.permute.xlu0 %1514 }
0x12f2   :  { %v1517_v25 = vadd.f32 %v1515_v24, %v1511_v21 }
0x12f4   :  { %3143 = vtanh.f32 %v1517_v25 }
0x12f5   :  { %v1198_v43 = vpop.permute.xlu0 %1197 }
0x12f6   :  { %2673 = vmatmul.mubr.msk.bf16.gmra.mxu0 %vm504_vm11, %v1198_v43 }
0x12f7   :  { %1315 = vmatprep.mubr.bf16.mxu0 %v3205_v0 }
0x12fe   :  { %2674 = vmatmul.mubr.msk.bf16.gmra.mxu0 %vm504_vm11, %v1200_v37 }
0x12ff   :  { %1561 = vmatprep.mubr.bf16.mxu0 %v3205_v0 }
0x1301   :  { %v3144_v19 = vpop.eup %3143 }
0x1302   :  { %v1519_v45 = vmul.f32 %v3144_v19, %v3140_v16 }
0x1304   :  { %v1522_v8 = vpack.c.bf16 %v1519_v45, %v1519_v45 }
0x1306   :  { %1524 = vrot.lane.b32.xlu0 %v1522_v8, %s3207_s4 }
0x1378   :  { %v3857_v26 = vpop.permute.xlu0 %1524 }
0x1379   :  { %2690 = vmatmul.mubr.msk.bf16.vlgmr.msra.gmra.mxu0 %vm504_vm11, %v3857_v26 }
0x137a   :  { %1688 = vmatpush1.bf16.msra.mxu0 %v3746_v28  ;;  %1711 = vmatprep.mubr.bf16.mxu0 %v3205_v0 }
0x137b   :  { %1689 = vmatprep.subr.bf16.mxu0 %v3754_v1 }
0x137e   :  { %1690 = vmatpush1.bf16.msra.mxu0 %v3761_v46 }
0x137f   :  { %1691 = vmatprep.subr.bf16.mxu0 %v3769_v60 }
0x1382   :  { %1692 = vmatpush1.bf16.msra.mxu0 %v3776_v57 }
0x1383   :  { %1693 = vmatprep.subr.bf16.mxu0 %v3783_v15 }
0x1386   :  { %1694 = vmatpush1.bf16.msra.mxu0 %v3790_v33 }
0x1387   :  { %1837 = vmatprep.subr.bf16.mxu0 %v3741_v27 }
0x13b6   :  { %v3870_v10 = vpop.f32.mrf.mxu0 }
0x13b8   :  { %v3872_v50 = vpop.f32.mrf.mxu0 }
0x13ba   :  { %v3874_v44 = vpop.f32.mrf.mxu0 }
0x13bc   :  { %v3876_v34 = vpop.f32.mrf.mxu0 }
0x13be   :  { %v3878_v52 = vpop.f32.mrf.mxu0 }
0x13c0   :  { %v3880_v53 = vpop.f32.mrf.mxu0 }
0x13c2   :  { %v3882_v54 = vpop.f32.mrf.mxu0 }
0x13c4   :  { %v3886_v2 = vpop.f32.mrf.mxu0 }
0x1439   :  { %v1563_v17 = vpop.f32.mrf.mxu0 }
0x143a   :  { %v1570_v4 = vadd.f32 %v1563_v17, %v1342_v3  ;;  %v1345_v17 = vadd.f32 %v3727_v58, %v1304_v47 }
0x143b   :  { %v1565_v59 = vpop.f32.mrf.mxu0 }
0x143c   :  { %v2691_v40 = vmul.f32 -1.442695, %v1570_v4  ;;  %v1571_v11 = vadd.f32 %v1565_v59, %v1343_v5 }
0x143d   :  { %v1567_v41 = vpop.f32.mrf.mxu0 }
0x143e   :  { %v2692_v30 = vmul.f32 -1.442695, %v1571_v11  ;;  %3145 = vpow2.f32 %v2691_v40 }
0x143f   :  { %v1568_v12 = vpop.f32.mrf.mxu0 }
0x1440   :  { %3147 = vpow2.f32 %v2692_v30 }
0x144b   :  { %v3146_v16 = vpop.eup %3145 }
0x144c   :  { %v1578_v61 = vadd.f32 1.0, %v3146_v16 }
0x144d   :  { %v3148_v31 = vpop.eup %3147 }
0x144e   :  { %v1579_v29 = vadd.f32 1.0, %v3148_v31 }
0x1450   :  { %3149 = vrcp.f32 %v1579_v29 }
0x1451   :  { %3151 = vrcp.f32 %v1578_v61 }
0x145d   :  { %v3150_v32 = vpop.eup %3149 }
0x145e   :  { %v1584_v18 = vmul.f32 2.0, %v3150_v32  ;;  %v3152_v20 = vpop.eup %3151 }
0x145f   :  { %v1586_v24 = vmul.f32 %v3152_v20, %v1517_v25  ;;  %v1302_v25 = vadd.f32 %v1301_v38, %v3825_v51 }
0x1460   :  { %v2693_v23 = vadd.f32 -1.0, %v1584_v18 }
0x1461   :  { %v1344_v55 = vadd.f32 %v3723_v63, %v1302_v25 }
0x1462   :  { %v1587_v21 = vmul.f32 %v3152_v20, %v2693_v23 }
0x1464   :  { %1589 = vrot.lane.b32.xlu1 %v1587_v21, %s3207_s4 }
0x14d6   :  { %v1590_v43 = vpop.permute.xlu1 %1589 }
0x14d7   :  { %v1592_v37 = vadd.f32 %v1590_v43, %v1586_v24  ;;  %v1308_v24 = vadd.f32 %v3870_v10, %v3829_v7  ;;  %v1310_v43 = vadd.f32 %v3872_v50, %v3831_v48 }
0x14d9   :  { %3153 = vtanh.f32 %v1592_v37 }
0x14e6   :  { %v3154_v19 = vpop.eup %3153 }
0x14e7   :  { %v1594_v45 = vmul.f32 %v3154_v19, %v3150_v32 }
0x14e9   :  { %v1597_v8 = vpack.c.bf16 %v1594_v45, %v1594_v45 }
0x14eb   :  { %1599 = vrot.lane.b32.xlu0 %v1597_v8, %s3207_s4  ;;  %v1347_v8 = vadd.f32 %v3727_v58, %v1310_v43 }
0x155d   :  { %v3892_v49 = vpop.permute.xlu0 %1599 }
0x155e   :  { %2694 = vmatmul.mubr.msk.bf16.vlgmr.msra.gmra.mxu1 %vm504_vm11, %v3892_v49 }
0x155f   :  { %1763 = vmatpush1.bf16.msra.mxu1 %v3746_v28  ;;  %1786 = vmatprep.mubr.bf16.mxu1 %v3205_v0 }
0x1560   :  { %1764 = vmatprep.subr.bf16.mxu1 %v3754_v1 }
0x1563   :  { %1765 = vmatpush1.bf16.msra.mxu1 %v3761_v46 }
0x1564   :  { %1766 = vmatprep.subr.bf16.mxu1 %v3769_v60 }
0x1567   :  { %1767 = vmatpush1.bf16.msra.mxu1 %v3776_v57 }
0x1568   :  { %1768 = vmatprep.subr.bf16.mxu1 %v3783_v15 }
0x156b   :  { %1769 = vmatpush1.bf16.msra.mxu1 %v3790_v33 }
0x156c   :  { %1912 = vmatprep.subr.bf16.mxu1 %v3741_v27 }
0x161e   :  { %v1638_v56 = vpop.f32.mrf.mxu1 }
0x161f   :  { %v1645_v3 = vadd.f32 %v1638_v56, %v1344_v55 }
0x1620   :  { %v1640_v4 = vpop.f32.mrf.mxu1 }
0x1621   :  { %v2695_v5 = vmul.f32 -1.442695, %v1645_v3  ;;  %v1646_v59 = vadd.f32 %v1640_v4, %v1345_v17 }
0x1622   :  { %v1642_v40 = vpop.f32.mrf.mxu1 }
0x1623   :  { %v2696_v11 = vmul.f32 -1.442695, %v1646_v59  ;;  %3155 = vpow2.f32 %v2695_v5 }
0x1624   :  { %v1643_v41 = vpop.f32.mrf.mxu1 }
0x1625   :  { %3157 = vpow2.f32 %v2696_v11 }
0x1630   :  { %v3156_v30 = vpop.eup %3155 }
0x1631   :  { %v1653_v51 = vadd.f32 1.0, %v3156_v30 }
0x1632   :  { %v3158_v27 = vpop.eup %3157 }
0x1633   :  { %v1654_v12 = vadd.f32 1.0, %v3158_v27 }
0x1635   :  { %3159 = vrcp.f32 %v1654_v12 }
0x1636   :  { %3161 = vrcp.f32 %v1653_v51 }
0x1642   :  { %v3160_v35 = vpop.eup %3159 }
0x1643   :  { %v1659_v38 = vmul.f32 2.0, %v3160_v35  ;;  %v3162_v16 = vpop.eup %3161 }
0x1644   :  { %v1661_v29 = vmul.f32 %v3162_v16, %v1592_v37  ;;  %v1346_v37 = vadd.f32 %v3723_v63, %v1308_v24 }
0x1645   :  { %v2697_v9 = vadd.f32 -1.0, %v1659_v38 }
0x1647   :  { %v1662_v31 = vmul.f32 %v3162_v16, %v2697_v9  ;;  %v1312_v9 = vadd.f32 %v3874_v44, %v3833_v36 }
0x1649   :  { %1664 = vrot.lane.b32.xlu1 %v1662_v31, %s3207_s4 }
0x16bb   :  { %v1665_v61 = vpop.permute.xlu1 %1664 }
0x16bc   :  { %v1667_v32 = vadd.f32 %v1665_v61, %v1661_v29 }
0x16be   :  { %3163 = vtanh.f32 %v1667_v32 }
0x16cb   :  { %v3164_v18 = vpop.eup %3163 }
0x16cc   :  { %v1669_v23 = vmul.f32 %v3164_v18, %v3160_v35 }
0x16ce   :  { %v1672_v20 = vpack.c.bf16 %v1669_v23, %v1669_v23 }
0x16d0   :  { %1674 = vrot.lane.b32.xlu0 %v1672_v20, %s3207_s4 }
0x1742   :  { %v3911_v21 = vpop.permute.xlu0 %1674 }
0x1743   :  { %2698 = vmatmul.mubr.msk.bf16.vlgmr.msra.gmra.mxu0 %vm504_vm11, %v3911_v21 }
0x1744   :  { %1838 = vmatpush1.bf16.msra.mxu0 %v3746_v28  ;;  %1861 = vmatprep.mubr.bf16.mxu0 %v3205_v0 }
0x1745   :  { %1839 = vmatprep.subr.bf16.mxu0 %v3754_v1 }
0x1748   :  { %1840 = vmatpush1.bf16.msra.mxu0 %v3761_v46 }
0x1749   :  { %1841 = vmatprep.subr.bf16.mxu0 %v3769_v60 }
0x174c   :  { %1842 = vmatpush1.bf16.msra.mxu0 %v3776_v57 }
0x174d   :  { %1843 = vmatprep.subr.bf16.mxu0 %v3783_v15 }
0x1750   :  { %1844 = vmatpush1.bf16.msra.mxu0 %v3790_v33 }
0x1751   :  { %2851 = vmatprep.subr.bf16.mxu0 %v3206_v22 }
0x1803   :  { %v1713_v19 = vpop.f32.mrf.mxu0 }
0x1804   :  { %v1720_v45 = vadd.f32 %v1713_v19, %v1346_v37 }
0x1805   :  { %v1715_v25 = vpop.f32.mrf.mxu0 }
0x1806   :  { %v2699_v47 = vmul.f32 -1.442695, %v1720_v45  ;;  %v1721_v55 = vadd.f32 %v1715_v25, %v1347_v8  ;;  %v3013_v25 = vld [vmem:[%s4163_s10 + $0x18] sm:$0xff]  }
0x1807   :  { %v1717_v56 = vpop.f32.mrf.mxu0 }
0x1808   :  { %v2700_v3 = vmul.f32 -1.442695, %v1721_v55  ;;  %3165 = vpow2.f32 %v2699_v47  ;;  %v3014_v55 = vld [vmem:[%s4163_s10 + $0x10] sm:$0xff]   ;;  %v3015_v56 = vld [vmem:[%s4163_s10 + $0x8] sm:$0xff]  }
0x1809   :  { %v1718_v17 = vpop.f32.mrf.mxu0 }
0x180a   :  { %3167 = vpow2.f32 %v2700_v3  ;;  %v3016_v3 = vld [vmem:[%s4163_s10] sm:$0xff]   ;;  %v3017_v17 = vld [vmem:[%s4163_s10 + $0x58] sm:$0xff]  }
0x1815   :  { %v3166_v4 = vpop.eup %3165 }
0x1816   :  { %v1728_v10 = vadd.f32 1.0, %v3166_v4  ;;  %v3018_v4 = vld [vmem:[%s4163_s10 + $0x50] sm:$0xff]  }
0x1817   :  { %v3168_v5 = vpop.eup %3167 }
0x1818   :  { %v1729_v7 = vadd.f32 1.0, %v3168_v5  ;;  %v3019_v5 = vld [vmem:[%s4163_s10 + $0x48] sm:$0xff]  }
0x181a   :  { %3169 = vrcp.f32 %v1729_v7  ;;  %v3021_v7 = vld [vmem:[%s4163_s10 + $0x98] sm:$0xff]  }
0x181b   :  { %3171 = vrcp.f32 %v1728_v10  ;;  %v3022_v10 = vld [vmem:[%s4163_s10 + $0x90] sm:$0xff]  }
0x1827   :  { %v3170_v48 = vpop.eup %3169 }
0x1828   :  { %v1734_v50 = vmul.f32 2.0, %v3170_v48  ;;  %v3172_v40 = vpop.eup %3171 }
0x1829   :  { %v1736_v41 = vmul.f32 %v3172_v40, %v1667_v32 }
0x182a   :  { %v2701_v59 = vadd.f32 -1.0, %v1734_v50  ;;  %v1318_v50 = vadd.f32 %v3878_v52, %v3837_v42 }
0x182c   :  { %v1737_v11 = vmul.f32 %v3172_v40, %v2701_v59  ;;  %v1320_v59 = vadd.f32 %v3880_v53, %v3839_v13  ;;  %v1350_v40 = vadd.f32 %v3723_v63, %v1318_v50  ;;  %v1322_v50 = vadd.f32 %v3882_v54, %v3841_v14 }
0x182e   :  { %1739 = vrot.lane.b32.xlu1 %v1737_v11, %s3207_s4 }
0x18a0   :  { %v1740_v30 = vpop.permute.xlu1 %1739 }
0x18a1   :  { %v1742_v27 = vadd.f32 %v1740_v30, %v1736_v41  ;;  %v1351_v30 = vadd.f32 %v3727_v58, %v1320_v59  ;;  %v1324_v59 = vadd.f32 %v3886_v2, %v3843_v62 }
0x18a3   :  { %3173 = vtanh.f32 %v1742_v27 }
0x18b0   :  { %v3174_v12 = vpop.eup %3173 }
0x18b1   :  { %v1744_v51 = vmul.f32 %v3174_v12, %v3170_v48  ;;  %v3023_v48 = vld [vmem:[%s4163_s10 + $0x88] sm:$0xff]  }
0x18b3   :  { %v1747_v35 = vpack.c.bf16 %v1744_v51, %v1744_v51 }
0x18b5   :  { %1749 = vrot.lane.b32.xlu0 %v1747_v35, %s3207_s4 }
0x1927   :  { %v3932_v38 = vpop.permute.xlu0 %1749 }
0x1928   :  { %2702 = vmatmul.mubr.msk.bf16.vlgmr.msra.gmra.mxu1 %vm504_vm11, %v3932_v38 }
0x1929   :  { %1913 = vmatpush1.bf16.msra.mxu1 %v3746_v28  ;;  %1936 = vmatprep.mubr.bf16.mxu1 %v3205_v0  ;;  %v1314_v0 = vadd.f32 %v3876_v34, %v3835_v6  ;;  %v1348_v28 = vadd.f32 %v3723_v63, %v1312_v9 }
0x192a   :  { %1914 = vmatprep.subr.bf16.mxu1 %v3754_v1 }
0x192d   :  { %1915 = vmatpush1.bf16.msra.mxu1 %v3761_v46 }
0x192e   :  { %1916 = vmatprep.subr.bf16.mxu1 %v3769_v60  ;;  %v1349_v60 = vadd.f32 %v3727_v58, %v1314_v0 }
0x1931   :  { %1917 = vmatpush1.bf16.msra.mxu1 %v3776_v57 }
0x1932   :  { %1918 = vmatprep.subr.bf16.mxu1 %v3783_v15 }
0x1935   :  { %1919 = vmatpush1.bf16.msra.mxu1 %v3790_v33 }
0x1936   :  { %2863 = vmatprep.subr.bf16.mxu1 %v3206_v22 }
0x19e8   :  { %v1788_v1 = vpop.f32.mrf.mxu1 }
0x19e9   :  { %v1795_v46 = vadd.f32 %v1788_v1, %v1348_v28 }
0x19ea   :  { %v1790_v16 = vpop.f32.mrf.mxu1 }
0x19eb   :  { %v2703_v57 = vmul.f32 -1.442695, %v1795_v46  ;;  %v1796_v31 = vadd.f32 %v1790_v16, %v1349_v60 }
0x19ec   :  { %v1792_v15 = vpop.f32.mrf.mxu1 }
0x19ed   :  { %v2704_v29 = vmul.f32 -1.442695, %v1796_v31  ;;  %3175 = vpow2.f32 %v2703_v57 }
0x19ee   :  { %v1793_v33 = vpop.f32.mrf.mxu1 }
0x19ef   :  { %3177 = vpow2.f32 %v2704_v29 }
0x19fa   :  { %v3176_v61 = vpop.eup %3175 }
0x19fb   :  { %v1803_v44 = vadd.f32 1.0, %v3176_v61 }
0x19fc   :  { %v3178_v32 = vpop.eup %3177 }
0x19fd   :  { %v1804_v36 = vadd.f32 1.0, %v3178_v32 }
0x19ff   :  { %3179 = vrcp.f32 %v1804_v36 }
0x1a00   :  { %3181 = vrcp.f32 %v1803_v44 }
0x1a0c   :  { %v3180_v6 = vpop.eup %3179 }
0x1a0d   :  { %v1809_v34 = vmul.f32 2.0, %v3180_v6  ;;  %v3182_v23 = vpop.eup %3181 }
0x1a0e   :  { %v1811_v24 = vmul.f32 %v3182_v23, %v1742_v27 }
0x1a0f   :  { %v2705_v18 = vadd.f32 -1.0, %v1809_v34 }
0x1a11   :  { %v1812_v20 = vmul.f32 %v3182_v23, %v2705_v18  ;;  %v3026_v18 = vld [vmem:[%s4163_s10 + $0xd0] sm:$0xff]  }
0x1a13   :  { %1814 = vrot.lane.b32.xlu1 %v1812_v20, %s3207_s4  ;;  %v3027_v20 = vld [vmem:[%s4163_s10 + $0xc8] sm:$0xff]  }
0x1a85   :  { %v1815_v43 = vpop.permute.xlu1 %1814 }
0x1a86   :  { %v3952_v37 = vadd.f32 %v1815_v43, %v1811_v24  ;;  %v3028_v24 = vld [vmem:[%s4163_s10 + $0xc0] sm:$0xff]  }
0x1a88   :  { %3183 = vtanh.f32 %v3952_v37 }
0x1a95   :  { %v3184_v19 = vpop.eup %3183 }
0x1a96   :  { %v1819_v45 = vmul.f32 %v3184_v19, %v3180_v6  ;;  %v3025_v6 = vld [vmem:[%s4163_s10 + $0xd8] sm:$0xff]  }
0x1a98   :  { %v1822_v8 = vpack.c.bf16 %v1819_v45, %v1819_v45 }
0x1a9a   :  { %1824 = vrot.lane.b32.xlu0 %v1822_v8, %s3207_s4 }
0x1b0c   :  { %v3959_v47 = vpop.permute.xlu0 %1824 }
0x1b0d   :  { %2706 = vmatmul.mubr.msk.bf16.vlgmr.msra.gmra.mxu0 %vm504_vm11, %v3959_v47 }
0x1b0e   :  { %2852 = vmatpush3.bf16.msra.mxu0 %v3013_v25  ;;  %2859 = vmatprep.mubr.msk.bf16.mxu0 %vm3208_vm2, %v3206_v22 }
0x1b0f   :  { %2853 = vmatprep.subr.bf16.mxu0 %v3206_v22 }
0x1b12   :  { %2854 = vmatpush3.bf16.msra.mxu0 %v3014_v55 }
0x1b13   :  { %2855 = vmatprep.subr.bf16.mxu0 %v3206_v22 }
0x1b16   :  { %2856 = vmatpush3.bf16.msra.mxu0 %v3015_v56  ;;  %v3029_v56 = vld [vmem:[%s4163_s10 + $0x38] sm:$0xff]  }
0x1b17   :  { %2857 = vmatprep.subr.bf16.mxu0 %v3206_v22 }
0x1b1a   :  { %2858 = vmatpush3.bf16.msra.mxu0 %v3016_v3 }
0x1b1b   :  { %2875 = vmatprep.subr.bf16.mxu0 %v3206_v22 }
0x1b1d   :  { %2860 = vmatmul.mubr.msk.bf16.vlgmr.msra.gmra.mxu0 %vm504_vm11, %v3808_v39  ;;  %v3020_v39 = vld [vmem:[%s4163_s10 + $0x40] sm:$0xff]  }
0x1b1e   :  { %2876 = vmatpush3.bf16.msra.mxu0 %v3017_v17  ;;  %2883 = vmatprep.mubr.msk.bf16.mxu0 %vm3208_vm2, %v3206_v22  ;;  %v3031_v17 = vld [vmem:[%s4163_s10 + $0x28] sm:$0xff]  }
0x1b1f   :  { %2877 = vmatprep.subr.bf16.mxu0 %v3206_v22 }
0x1b22   :  { %2878 = vmatpush3.bf16.msra.mxu0 %v3018_v4  ;;  %v3032_v4 = vld [vmem:[%s4163_s10 + $0x20] sm:$0xff]  }
0x1b23   :  { %2879 = vmatprep.subr.bf16.mxu0 %v3206_v22 }
0x1b26   :  { %2880 = vmatpush3.bf16.msra.mxu0 %v3019_v5  ;;  %v3033_v5 = vld [vmem:[%s4163_s10 + $0x78] sm:$0xff]  }
0x1b27   :  { %2881 = vmatprep.subr.bf16.mxu0 %v3206_v22 }
0x1b2a   :  { %2882 = vmatpush3.bf16.msra.mxu0 %v3020_v39  ;;  %v3034_v39 = vld [vmem:[%s4163_s10 + $0x70] sm:$0xff]  }
0x1b2b   :  { %2899 = vmatprep.subr.bf16.mxu0 %v3206_v22 }
0x1b2d   :  { %2884 = vmatmul.mubr.msk.bf16.vlgmr.msra.gmra.mxu0 %vm504_vm11, %v3892_v49  ;;  %v3024_v49 = vld [vmem:[%s4163_s10 + $0x80] sm:$0xff]  }
0x1b2e   :  { %2900 = vmatpush3.bf16.msra.mxu0 %v3021_v7  ;;  %2907 = vmatprep.mubr.msk.bf16.mxu0 %vm3208_vm2, %v3206_v22  ;;  %v3035_v7 = vld [vmem:[%s4163_s10 + $0x68] sm:$0xff]  }
0x1b2f   :  { %2901 = vmatprep.subr.bf16.mxu0 %v3206_v22 }
0x1b32   :  { %2902 = vmatpush3.bf16.msra.mxu0 %v3022_v10  ;;  %v3037_v10 = vld [vmem:[%s4163_s10 + $0xb8] sm:$0xff]  }
0x1b33   :  { %2903 = vmatprep.subr.bf16.mxu0 %v3206_v22 }
0x1b36   :  { %2904 = vmatpush3.bf16.msra.mxu0 %v3023_v48  ;;  %v3038_v48 = vld [vmem:[%s4163_s10 + $0xb0] sm:$0xff]  }
0x1b37   :  { %2905 = vmatprep.subr.bf16.mxu0 %v3206_v22 }
0x1b3a   :  { %2906 = vmatpush3.bf16.msra.mxu0 %v3024_v49  ;;  %v3039_v49 = vld [vmem:[%s4163_s10 + $0xa8] sm:$0xff]  }
0x1b3b   :  { %2923 = vmatprep.subr.bf16.mxu0 %v3206_v22 }
0x1b3d   :  { %2908 = vmatmul.mubr.msk.bf16.vlgmr.msra.gmra.mxu0 %vm504_vm11, %v3932_v38 }
0x1b3e   :  { %2931 = vmatprep.mubr.msk.bf16.mxu0 %vm3208_vm2, %v3206_v22  ;;  %2924 = vmatpush3.bf16.msra.mxu0 %v3025_v6 }
0x1b3f   :  { %2925 = vmatprep.subr.bf16.mxu0 %v3206_v22 }
0x1b42   :  { %2926 = vmatpush3.bf16.msra.mxu0 %v3026_v18 }
0x1b43   :  { %2927 = vmatprep.subr.bf16.mxu0 %v3206_v22 }
0x1b46   :  { %2928 = vmatpush3.bf16.msra.mxu0 %v3027_v20 }
0x1b47   :  { %2929 = vmatprep.subr.bf16.mxu0 %v3206_v22 }
0x1b4a   :  { %2930 = vmatpush3.bf16.msra.mxu0 %v3028_v24 }
0x1bcd   :  { %v1863_v11 = vpop.f32.mrf.mxu0 }
0x1bce   :  { %v1870_v41 = vadd.f32 %v1863_v11, %v1350_v40  ;;  %v1352_v40 = vadd.f32 %v3723_v63, %v1322_v50  ;;  %v2714_v63 = vld [vmem:[%s4164_s11] ss:$0 sm:$0xff] }
0x1bcf   :  { %v1865_v27 = vpop.f32.mrf.mxu0 }
0x1bd0   :  { %v2707_v12 = vmul.f32 -1.442695, %v1870_v41  ;;  %v1871_v51 = vadd.f32 %v1865_v27, %v1351_v30  ;;  %v1353_v27 = vadd.f32 %v3727_v58, %v1324_v59 }
0x1bd1   :  { %v1867_v35 = vpop.f32.mrf.mxu0 }
0x1bd2   :  { %v2708_v38 = vmul.f32 -1.442695, %v1871_v51  ;;  %3185 = vpow2.f32 %v2707_v12 }
0x1bd3   :  { %v1868_v9 = vpop.f32.mrf.mxu0 }
0x1bd4   :  { %3187 = vpow2.f32 %v2708_v38 }
0x1bdd   :  { %v4028_v0 = vpop.f32.mrf.mxu0 }
0x1bde   :  { %v2049_v62 = vadd.f32 %v2714_v63, %v4028_v0 }
0x1bdf   :  { %v2861_v42 = vpop.f32.mrf.mxu0  ;;  %v3186_v52 = vpop.eup %3185 }
0x1be0   :  { %v1878_v46 = vadd.f32 1.0, %v3186_v52 }
0x1be1   :  { %v3188_v28 = vpop.eup %3187  ;;  %v2046_v13 = vpop.f32.mrf.mxu0 }
0x1be2   :  { %v1879_v53 = vadd.f32 1.0, %v3188_v28 }
0x1be3   :  { %v2862_v1 = vpop.f32.mrf.mxu0 }
0x1be4   :  { %3189 = vrcp.f32 %v1879_v53 }
0x1be5   :  { %3191 = vrcp.f32 %v1878_v46 }
0x1bed   :  { %v4030_v60 = vpop.f32.mrf.mxu0 }
0x1bef   :  { %v2885_v16 = vpop.f32.mrf.mxu0 }
0x1bf1   :  { %v3190_v57 = vpop.eup %3189  ;;  %v2194_v31 = vpop.f32.mrf.mxu0 }
0x1bf2   :  { %v1884_v15 = vmul.f32 2.0, %v3190_v57  ;;  %v3192_v61 = vpop.eup %3191 }
0x1bf3   :  { %v2886_v29 = vpop.f32.mrf.mxu0  ;;  %v1886_v43 = vmul.f32 %v3192_v61, %v3952_v37  ;;  %v3030_v37 = vld [vmem:[%s4163_s10 + $0x30] sm:$0xff]  }
0x1bf4   :  { %v2709_v33 = vadd.f32 -1.0, %v1884_v15 }
0x1bf6   :  { %v1887_v32 = vmul.f32 %v3192_v61, %v2709_v33 }
0x1bf8   :  { %1889 = vrot.lane.b32.xlu1 %v1887_v32, %s3207_s4 }
0x1bfd   :  { %v4033_v36 = vpop.f32.mrf.mxu0 }
0x1bff   :  { %v2909_v44 = vpop.f32.mrf.mxu0 }
0x1c01   :  { %v2342_v34 = vpop.f32.mrf.mxu0 }
0x1c03   :  { %v2910_v23 = vpop.f32.mrf.mxu0 }
0x1c6a   :  { %v1890_v19 = vpop.permute.xlu1 %1889 }
0x1c6b   :  { %v4051_v45 = vadd.f32 %v1890_v19, %v1886_v43 }
0x1c6d   :  { %3193 = vtanh.f32 %v4051_v45 }
0x1c7a   :  { %v3194_v8 = vpop.eup %3193 }
0x1c7b   :  { %v1894_v25 = vmul.f32 %v3194_v8, %v3190_v57  ;;  %v3042_v8 = vld [vmem:[%s4163_s10 + $0xf0] sm:$0xff]  }
0x1c7d   :  { %v1897_v55 = vpack.c.bf16 %v1894_v25, %v1894_v25 }
0x1c7f   :  { %1899 = vrot.lane.b32.xlu0 %v1897_v55, %s3207_s4  ;;  %v3044_v55 = vld [vmem:[%s4163_s10 + $0xe0] sm:$0xff]  }
0x1cf1   :  { %v1900_v3 = vpop.permute.xlu0 %1899 }
0x1cf2   :  { %2710 = vmatmul.mubr.msk.bf16.vlgmr.msra.gmra.mxu1 %vm504_vm11, %v1900_v3  ;;  %2932 = vmatmul.mubr.msk.bf16.vlgmr.msra.gmra.mxu0 %vm504_vm11, %v1900_v3 }
0x1cf3   :  { %2864 = vmatpush3.bf16.msra.mxu1 %v3029_v56  ;;  %2871 = vmatprep.mubr.msk.bf16.mxu1 %vm3208_vm2, %v3206_v22 }
0x1cf4   :  { %2865 = vmatprep.subr.bf16.mxu1 %v3206_v22 }
0x1cf7   :  { %2866 = vmatpush3.bf16.msra.mxu1 %v3030_v37 }
0x1cf8   :  { %2867 = vmatprep.subr.bf16.mxu1 %v3206_v22 }
0x1cfb   :  { %2868 = vmatpush3.bf16.msra.mxu1 %v3031_v17 }
0x1cfc   :  { %2869 = vmatprep.subr.bf16.mxu1 %v3206_v22 }
0x1cff   :  { %2870 = vmatpush3.bf16.msra.mxu1 %v3032_v4 }
0x1d00   :  { %2887 = vmatprep.subr.bf16.mxu1 %v3206_v22 }
0x1d02   :  { %2872 = vmatmul.mubr.msk.bf16.vlgmr.msra.gmra.mxu1 %vm504_vm11, %v3857_v26  ;;  %v3036_v26 = vld [vmem:[%s4163_s10 + $0x60] sm:$0xff]  }
0x1d03   :  { %2888 = vmatpush3.bf16.msra.mxu1 %v3033_v5  ;;  %2895 = vmatprep.mubr.msk.bf16.mxu1 %vm3208_vm2, %v3206_v22 }
0x1d04   :  { %2889 = vmatprep.subr.bf16.mxu1 %v3206_v22 }
0x1d07   :  { %2890 = vmatpush3.bf16.msra.mxu1 %v3034_v39 }
0x1d08   :  { %2891 = vmatprep.subr.bf16.mxu1 %v3206_v22 }
0x1d0b   :  { %2892 = vmatpush3.bf16.msra.mxu1 %v3035_v7 }
0x1d0c   :  { %2893 = vmatprep.subr.bf16.mxu1 %v3206_v22 }
0x1d0f   :  { %2894 = vmatpush3.bf16.msra.mxu1 %v3036_v26 }
0x1d10   :  { %2911 = vmatprep.subr.bf16.mxu1 %v3206_v22 }
0x1d12   :  { %2896 = vmatmul.mubr.msk.bf16.vlgmr.msra.gmra.mxu1 %vm504_vm11, %v3911_v21  ;;  %v3040_v21 = vld [vmem:[%s4163_s10 + $0xa0] sm:$0xff]  }
0x1d13   :  { %2912 = vmatpush3.bf16.msra.mxu1 %v3037_v10  ;;  %2919 = vmatprep.mubr.msk.bf16.mxu1 %vm3208_vm2, %v3206_v22 }
0x1d14   :  { %2913 = vmatprep.subr.bf16.mxu1 %v3206_v22 }
0x1d17   :  { %2914 = vmatpush3.bf16.msra.mxu1 %v3038_v48 }
0x1d18   :  { %2915 = vmatprep.subr.bf16.mxu1 %v3206_v22 }
0x1d1b   :  { %2916 = vmatpush3.bf16.msra.mxu1 %v3039_v49 }
0x1d1c   :  { %2917 = vmatprep.subr.bf16.mxu1 %v3206_v22 }
0x1d1f   :  { %2918 = vmatpush3.bf16.msra.mxu1 %v3040_v21 }
0x1d20   :  { %2935 = vmatprep.subr.bf16.mxu1 %v3206_v22 }
0x1d22   :  { %2920 = vmatmul.mubr.msk.bf16.vlgmr.msra.gmra.mxu1 %vm504_vm11, %v3959_v47 }
0x1d23   :  { %2943 = vmatprep.mubr.msk.bf16.mxu1 %vm3208_vm2, %v3206_v22 }
0x1db2   :  { %v1938_v11 = vpop.f32.mrf.mxu1  ;;  %v2487_v41 = vpop.f32.mrf.mxu0 }
0x1db3   :  { %v1945_v30 = vadd.f32 %v1938_v11, %v1352_v40 }
0x1db4   :  { %v1940_v12 = vpop.f32.mrf.mxu1  ;;  %v2933_v51 = vpop.f32.mrf.mxu0 }
0x1db5   :  { %v2711_v35 = vmul.f32 -1.442695, %v1945_v30  ;;  %v1946_v47 = vadd.f32 %v1940_v12, %v1353_v27 }
0x1db6   :  { %v1942_v38 = vpop.f32.mrf.mxu1  ;;  %v2490_v9 = vpop.f32.mrf.mxu0 }
0x1db7   :  { %v2712_v42 = vmul.f32 -1.442695, %v1946_v47  ;;  %3195 = vpow2.f32 %v2711_v35 }
0x1db8   :  { %v1943_v52 = vpop.f32.mrf.mxu1  ;;  %v2934_v14 = vpop.f32.mrf.mxu0 }
0x1db9   :  { %3197 = vpow2.f32 %v2712_v42 }
0x1dc2   :  { %v2117_v54 = vpop.f32.mrf.mxu1 }
0x1dc3   :  { %v2123_v2 = vadd.f32 %v2117_v54, %v2049_v62 }
0x1dc4   :  { %v2873_v58 = vpop.f32.mrf.mxu1  ;;  %v3196_v28 = vpop.eup %3195 }
0x1dc5   :  { %v1953_v16 = vadd.f32 1.0, %v3196_v28  ;;  %v2197_v57 = vadd.f32 %v4030_v60, %v2123_v2  ;;  %v3041_v60 = vld [vmem:[%s4163_s10 + $0xf8] sm:$0xff]  }
0x1dc6   :  { %v3198_v13 = vpop.eup %3197  ;;  %v2120_v53 = vpop.f32.mrf.mxu1  ;;  %2936 = vmatpush3.bf16.msra.mxu1 %v3041_v60 }
0x1dc7   :  { %v1954_v1 = vadd.f32 1.0, %v3198_v13  ;;  %2937 = vmatprep.subr.bf16.mxu1 %v3206_v22 }
0x1dc8   :  { %v2874_v46 = vpop.f32.mrf.mxu1 }
0x1dc9   :  { %3199 = vrcp.f32 %v1954_v1 }
0x1dca   :  { %3201 = vrcp.f32 %v1953_v16  ;;  %2938 = vmatpush3.bf16.msra.mxu1 %v3042_v8 }
0x1dcb   :  { %2939 = vmatprep.subr.bf16.mxu1 %v3206_v22 }
0x1dd2   :  { %v2265_v31 = vpop.f32.mrf.mxu1 }
0x1dd3   :  { %v2271_v15 = vadd.f32 %v2265_v31, %v2197_v57 }
0x1dd4   :  { %v2897_v29 = vpop.f32.mrf.mxu1 }
0x1dd5   :  { %v2345_v18 = vadd.f32 %v4033_v36, %v2271_v15  ;;  %v3043_v36 = vld [vmem:[%s4163_s10 + $0xe8] sm:$0xff]  }
0x1dd6   :  { %v3200_v33 = vpop.eup %3199  ;;  %v2268_v61 = vpop.f32.mrf.mxu1  ;;  %2940 = vmatpush3.bf16.msra.mxu1 %v3043_v36 }
0x1dd7   :  { %v1959_v32 = vmul.f32 2.0, %v3200_v33  ;;  %v3202_v6 = vpop.eup %3201  ;;  %2941 = vmatprep.subr.bf16.mxu1 %v3206_v22 }
0x1dd8   :  { %v2898_v0 = vpop.f32.mrf.mxu1  ;;  %v1961_v56 = vmul.f32 %v3202_v6, %v4051_v45 }
0x1dd9   :  { %v2713_v44 = vadd.f32 -1.0, %v1959_v32 }
0x1dda   :  { %2942 = vmatpush3.bf16.msra.mxu1 %v3044_v55 }
0x1ddb   :  { %v1962_v34 = vmul.f32 %v3202_v6, %v2713_v44 }
0x1ddd   :  { %1964 = vrot.lane.b32.xlu1 %v1962_v34, %s3207_s4 }
0x1de2   :  { %v2413_v23 = vpop.f32.mrf.mxu1 }
0x1de3   :  { %v2419_v20 = vadd.f32 %v2413_v23, %v2345_v18 }
0x1de4   :  { %v2921_v24 = vpop.f32.mrf.mxu1 }
0x1de5   :  { %v2493_v43 = vadd.f32 %v2487_v41, %v2419_v20 }
0x1de6   :  { %v2416_v19 = vpop.f32.mrf.mxu1 }
0x1de8   :  { %v2922_v25 = vpop.f32.mrf.mxu1 }
0x1e4f   :  { %v1965_v3 = vpop.permute.xlu1 %1964 }
0x1e50   :  { %v1967_v37 = vadd.f32 %v1965_v3, %v1961_v56 }
0x1e52   :  { %3203 = vtanh.f32 %v1967_v37 }
0x1e5f   :  { %v3204_v17 = vpop.eup %3203 }
0x1e60   :  { %v1969_v4 = vmul.f32 %v3204_v17, %v3200_v33 }
0x1e62   :  { %v2494_v5 = vpack.c.bf16 %v1969_v4, %v1969_v4 }
0x1e64   :  { %2505 = vrot.lane.b32.xlu0 %v2494_v5, %s3207_s4 }
0x1ed6   :  { %v2506_v39 = vpop.permute.xlu0 %2505 }
0x1ed7   :  { %2944 = vmatmul.mubr.msk.bf16.vlgmr.msra.gmra.mxu1 %vm504_vm11, %v2506_v39 }
0x1f97   :  { %v2568_v7 = vpop.f32.mrf.mxu1 }
0x1f98   :  { %v2574_v26 = vadd.f32 %v2568_v7, %v2493_v43 }
0x1f99   :  { %v2945_v10 = vpop.f32.mrf.mxu1 }
0x1f9a   :  { %2575 = vst [vmem:[%s4165_s12] sm:$0xff] %v2574_v26 }
0x1f9b   :  { %v2571_v22 = vpop.f32.mrf.mxu1 }
0x1f9d   :  { %v2946_v45 = vpop.f32.mrf.mxu1 }

</bundles_post_ra>
